<compile_context>
chip_gen: v7x
topology: tpu7x:2x2x1
jax: 0.10.0
libtpu: 0.0.40
codegen_flags: <defaults>
</compile_context>

<pallas_src>
import math

import jax
import jax.numpy as jnp
from jax.experimental import pallas as pl
from jax.experimental.pallas import tpu as pltpu

# ----------------------------- config -----------------------------
IN_CH = 4
IMG = 16
PATCH = 4
HIDDEN = 32
MLP_DIM = 64
NUM_LAYERS = 2
NUM_HEADS = 4
HEAD_DIM = HIDDEN // NUM_HEADS
N_PATCH = (IMG // PATCH) ** 2          # 16 patches
PATCH_DIM = IN_CH * PATCH * PATCH      # 64
EPS = 1e-5


# --------------------------- in-kernel helpers ---------------------------
def _erf(x):
    # Abramowitz & Stegun 7.1.26 rational approx (max abs err ~1.5e-7).
    a1, a2, a3, a4, a5 = (0.254829592, -0.284496736, 1.421413741,
                          -1.453152027, 1.061405429)
    p = 0.3275911
    z = jnp.abs(x)
    t = 1.0 / (1.0 + p * z)
    poly = ((((a5 * t + a4) * t + a3) * t + a2) * t + a1) * t
    y = 1.0 - poly * jnp.exp(-z * z)
    return jnp.where(x >= 0.0, y, -y)


def _gelu(x):
    # exact (erf-based) GELU, matching torch.nn.GELU() default
    return 0.5 * x * (1.0 + _erf(x * (1.0 / math.sqrt(2.0))))


def _layernorm(x, g, b):
    mu = jnp.mean(x, axis=-1, keepdims=True)
    var = jnp.mean((x - mu) * (x - mu), axis=-1, keepdims=True)
    return (x - mu) * jax.lax.rsqrt(var + EPS) * g + b


# ------------------------------ fused kernel ------------------------------
def vit_kernel(patches_ref, pw_ref, pb_ref, pos_ref,
               ln1g_ref, ln1b_ref, wqkv_ref, wout_ref, bout_ref,
               ln2g_ref, ln2b_ref, w1_ref, b1_ref, w2_ref, b2_ref,
               ng_ref, nb_ref, o_ref):
    # ---- patch embedding + learnable positional embedding ----
    x = (jnp.dot(patches_ref[0], pw_ref[...],
                 preferred_element_type=jnp.float32)
         + pb_ref[...] + pos_ref[...])                       # (N, H)

    scale = 1.0 / math.sqrt(HEAD_DIM)

    for l in range(NUM_LAYERS):                              # static unroll
        # ---- multi-head self-attention (pre-LN, qkv_bias=False) ----
        xn = _layernorm(x, ln1g_ref[l], ln1b_ref[l])
        qkv = jnp.dot(xn, wqkv_ref[l],
                      preferred_element_type=jnp.float32)    # (N, 3H)
        # head-batched views: (NUM_HEADS, N, HEAD_DIM)
        q = jnp.stack([qkv[:, h * HEAD_DIM:(h + 1) * HEAD_DIM]
                       for h in range(NUM_HEADS)], axis=0)
        k = jnp.stack([qkv[:, HIDDEN + h * HEAD_DIM:HIDDEN + (h + 1) * HEAD_DIM]
                       for h in range(NUM_HEADS)], axis=0)
        v = jnp.stack([qkv[:, 2 * HIDDEN + h * HEAD_DIM:
                           2 * HIDDEN + (h + 1) * HEAD_DIM]
                       for h in range(NUM_HEADS)], axis=0)
        # scores: contraction over the last dim of both (no explicit k.T)
        s = jnp.einsum('hqd,hkd->hqk', q, k,
                       preferred_element_type=jnp.float32) * scale
        s = s - jnp.max(s, axis=-1, keepdims=True)
        p = jnp.exp(s)
        p = p * pl.reciprocal(jnp.sum(p, axis=-1, keepdims=True), approx=True)
        o = jnp.einsum('hqk,hkd->hqd', p, v,
                       preferred_element_type=jnp.float32)   # (heads, N, d)
        # output projection folded per head (avoids lane concat), then summed
        attn = jnp.einsum('hqd,hdo->hqo', o, wout_ref[l],
                          preferred_element_type=jnp.float32)  # (heads, N, H)
        attn = jnp.sum(attn, axis=0) + bout_ref[l]           # (N, H)
        x = x + attn                                         # residual

        # ---- MLP (pre-LN, GELU) ----
        xn = _layernorm(x, ln2g_ref[l], ln2b_ref[l])
        h1 = _gelu(jnp.dot(xn, w1_ref[l],
                           preferred_element_type=jnp.float32) + b1_ref[l])
        x = x + jnp.dot(h1, w2_ref[l],
                        preferred_element_type=jnp.float32) + b2_ref[l]

    # ---- final LayerNorm ----
    o_ref[0] = _layernorm(x, ng_ref[...], nb_ref[...])


# ------------------------------ wrapper ------------------------------
def _full_spec(shape):
    return pl.BlockSpec(shape, lambda b: (0,) * len(shape))


def vit_forward(x, params):
    B = x.shape[0]
    patches = extract_patches(x)                             # (B, N, PATCH_DIM)
    return pl.pallas_call(
        vit_kernel,
        out_shape=jax.ShapeDtypeStruct((B, N_PATCH, HIDDEN), jnp.float32),
        grid_spec=pl.GridSpec(
            grid=(B,),
            in_specs=[
                pl.BlockSpec((1, N_PATCH, PATCH_DIM), lambda b: (b, 0, 0)),
                _full_spec((PATCH_DIM, HIDDEN)),                       # patch_w
                _full_spec((1, HIDDEN)),                               # patch_b
                _full_spec((N_PATCH, HIDDEN)),                         # pos
                _full_spec((NUM_LAYERS, 1, HIDDEN)),                   # ln1 g
                _full_spec((NUM_LAYERS, 1, HIDDEN)),                   # ln1 b
                _full_spec((NUM_LAYERS, HIDDEN, 3 * HIDDEN)),          # Wqkv
                _full_spec((NUM_LAYERS, NUM_HEADS, HEAD_DIM, HIDDEN)),  # Wout/head
                _full_spec((NUM_LAYERS, 1, HIDDEN)),                   # bout
                _full_spec((NUM_LAYERS, 1, HIDDEN)),                   # ln2 g
                _full_spec((NUM_LAYERS, 1, HIDDEN)),                   # ln2 b
                _full_spec((NUM_LAYERS, HIDDEN, MLP_DIM)),             # W1
                _full_spec((NUM_LAYERS, 1, MLP_DIM)),                  # b1
                _full_spec((NUM_LAYERS, MLP_DIM, HIDDEN)),             # W2
                _full_spec((NUM_LAYERS, 1, HIDDEN)),                   # b2
                _full_spec((1, HIDDEN)),                               # norm_g
                _full_spec((1, HIDDEN)),                               # norm_b
            ],
            out_specs=pl.BlockSpec((1, N_PATCH, HIDDEN), lambda b: (b, 0, 0))),
        compiler_params=pltpu.CompilerParams(dimension_semantics=("parallel",)),
    )(patches, params["patch_w"], params["patch_b"], params["pos"],
      params["ln1_g"], params["ln1_b"], params["wqkv"], params["wout_h"],
      params["bout"], params["ln2_g"], params["ln2_b"], params["w1"],
      params["b1"], params["w2"], params["b2"],
      params["norm_g"], params["norm_b"])
    # classification=False: returns the full token sequence (no cls head).
    # TODO(synk): dropout_rate=0.0 (identity) is omitted; nonzero dropout not modeled.


# ------------------------------ glue ------------------------------
def extract_patches(x):
    # NCHW -> (B, n_patches, C*p*p) with per-patch (c, i, j) flattening,
    # matching Conv2d(kernel=stride=patch) followed by flatten(2).transpose(1,2)
    B, C, H, W = x.shape
    gh, gw = H // PATCH, W // PATCH
    x = x.reshape(B, C, gh, PATCH, gw, PATCH)
    x = x.transpose(0, 2, 4, 1, 3, 5)        # (B, gh, gw, C, p, p)
    return x.reshape(B, gh * gw, C * PATCH * PATCH)


def init_params(key):
    std = 0.02
    ks = jax.random.split(key, 2 + NUM_LAYERS)
    params = {
        "patch_w": jax.random.normal(ks[0], (PATCH_DIM, HIDDEN), jnp.float32) * std,
        "patch_b": jnp.zeros((1, HIDDEN), jnp.float32),
        "pos":     jax.random.normal(ks[1], (N_PATCH, HIDDEN), jnp.float32) * std,
        "norm_g":  jnp.ones((1, HIDDEN), jnp.float32),
        "norm_b":  jnp.zeros((1, HIDDEN), jnp.float32),
    }
    wqkv, wout, w1, w2 = [], [], [], []
    for l in range(NUM_LAYERS):
        kb = jax.random.split(ks[2 + l], 4)
        wqkv.append(jax.random.normal(kb[0], (HIDDEN, 3 * HIDDEN), jnp.float32) * std)
        wout.append(jax.random.normal(kb[1], (HIDDEN, HIDDEN), jnp.float32) * std)
        w1.append(jax.random.normal(kb[2], (HIDDEN, MLP_DIM), jnp.float32) * std)
        w2.append(jax.random.normal(kb[3], (MLP_DIM, HIDDEN), jnp.float32) * std)
    params["ln1_g"] = jnp.ones((NUM_LAYERS, 1, HIDDEN), jnp.float32)
    params["ln1_b"] = jnp.zeros((NUM_LAYERS, 1, HIDDEN), jnp.float32)
    params["wqkv"] = jnp.stack(wqkv)                         # (L, H, 3H), heads-major cols
    # Wout rows pre-split per head (heads-major), matching the heads-major
    # concat of the attention output: sum_h o_h @ Wout[h*d:(h+1)*d, :]
    params["wout_h"] = jnp.stack(wout).reshape(NUM_LAYERS, NUM_HEADS, HEAD_DIM, HIDDEN)
    params["bout"] = jnp.zeros((NUM_LAYERS, 1, HIDDEN), jnp.float32)
    params["ln2_g"] = jnp.ones((NUM_LAYERS, 1, HIDDEN), jnp.float32)
    params["ln2_b"] = jnp.zeros((NUM_LAYERS, 1, HIDDEN), jnp.float32)
    params["w1"] = jnp.stack(w1)                             # (L, H, MLP)
    params["b1"] = jnp.zeros((NUM_LAYERS, 1, MLP_DIM), jnp.float32)
    params["w2"] = jnp.stack(w2)                             # (L, MLP, H)
    params["b2"] = jnp.zeros((NUM_LAYERS, 1, HIDDEN), jnp.float32)
    return params


if __name__ == "__main__":
    key = jax.random.PRNGKey(0)
    pkey, xkey = jax.random.split(key)
    params = init_params(pkey)
    x = jax.random.normal(xkey, (2, IN_CH, IMG, IMG), jnp.float32)  # NCHW like PyTorch
    out = jax.jit(vit_forward)(x, params)
    jax.block_until_ready(out)
    assert out.shape == (2, N_PATCH, HIDDEN)
    assert bool(jnp.all(jnp.isfinite(out)))
    print("KERNEL_OK")
</pallas_src>

<mosaic_0001>
module attributes {stable_mosaic.version = 11 : i64} {
  func.func @vit_kernel(%arg0: i32, %arg1: memref<1x16x64xf32, #tpu.memory_space<vmem>>, %arg2: memref<64x32xf32, #tpu.memory_space<vmem>>, %arg3: memref<1x32xf32, #tpu.memory_space<vmem>>, %arg4: memref<16x32xf32, #tpu.memory_space<vmem>>, %arg5: memref<2x1x32xf32, #tpu.memory_space<vmem>>, %arg6: memref<2x1x32xf32, #tpu.memory_space<vmem>>, %arg7: memref<2x32x96xf32, #tpu.memory_space<vmem>>, %arg8: memref<2x4x8x32xf32, #tpu.memory_space<vmem>>, %arg9: memref<2x1x32xf32, #tpu.memory_space<vmem>>, %arg10: memref<2x1x32xf32, #tpu.memory_space<vmem>>, %arg11: memref<2x1x32xf32, #tpu.memory_space<vmem>>, %arg12: memref<2x32x64xf32, #tpu.memory_space<vmem>>, %arg13: memref<2x1x64xf32, #tpu.memory_space<vmem>>, %arg14: memref<2x64x32xf32, #tpu.memory_space<vmem>>, %arg15: memref<2x1x32xf32, #tpu.memory_space<vmem>>, %arg16: memref<1x32xf32, #tpu.memory_space<vmem>>, %arg17: memref<1x32xf32, #tpu.memory_space<vmem>>, %arg18: memref<1x16x32xf32, #tpu.memory_space<vmem>>) attributes {dimension_semantics = [#tpu.dimension_semantics<parallel>], iteration_bounds = array<i64: 2>, scalar_prefetch = 0 : i64, scratch_operands = 0 : i64, tpu.core_type = #tpu.core_type<tc>, window_params = [{transform_indices = @transform_0, window_bounds = array<i64: 1, 16, 64>}, {pipeline_mode = #tpu.pipeline_mode<synchronous>, transform_indices = @transform_1, window_bounds = array<i64: 64, 32>}, {pipeline_mode = #tpu.pipeline_mode<synchronous>, transform_indices = @transform_2, window_bounds = array<i64: 1, 32>}, {pipeline_mode = #tpu.pipeline_mode<synchronous>, transform_indices = @transform_3, window_bounds = array<i64: 16, 32>}, {pipeline_mode = #tpu.pipeline_mode<synchronous>, transform_indices = @transform_4, window_bounds = array<i64: 2, 1, 32>}, {pipeline_mode = #tpu.pipeline_mode<synchronous>, transform_indices = @transform_5, window_bounds = array<i64: 2, 1, 32>}, {pipeline_mode = #tpu.pipeline_mode<synchronous>, transform_indices = @transform_6, window_bounds = array<i64: 2, 32, 96>}, {pipeline_mode = #tpu.pipeline_mode<synchronous>, transform_indices = @transform_7, window_bounds = array<i64: 2, 4, 8, 32>}, {pipeline_mode = #tpu.pipeline_mode<synchronous>, transform_indices = @transform_8, window_bounds = array<i64: 2, 1, 32>}, {pipeline_mode = #tpu.pipeline_mode<synchronous>, transform_indices = @transform_9, window_bounds = array<i64: 2, 1, 32>}, {pipeline_mode = #tpu.pipeline_mode<synchronous>, transform_indices = @transform_10, window_bounds = array<i64: 2, 1, 32>}, {pipeline_mode = #tpu.pipeline_mode<synchronous>, transform_indices = @transform_11, window_bounds = array<i64: 2, 32, 64>}, {pipeline_mode = #tpu.pipeline_mode<synchronous>, transform_indices = @transform_12, window_bounds = array<i64: 2, 1, 64>}, {pipeline_mode = #tpu.pipeline_mode<synchronous>, transform_indices = @transform_13, window_bounds = array<i64: 2, 64, 32>}, {pipeline_mode = #tpu.pipeline_mode<synchronous>, transform_indices = @transform_14, window_bounds = array<i64: 2, 1, 32>}, {pipeline_mode = #tpu.pipeline_mode<synchronous>, transform_indices = @transform_15, window_bounds = array<i64: 1, 32>}, {pipeline_mode = #tpu.pipeline_mode<synchronous>, transform_indices = @transform_16, window_bounds = array<i64: 1, 32>}, {transform_indices = @transform_17, window_bounds = array<i64: 1, 16, 32>}]} {
    %c0 = arith.constant 0 : index
    %c0_0 = arith.constant 0 : index
    %c0_1 = arith.constant 0 : index
    %0 = vector.load %arg1[%c0, %c0_0, %c0_1] : memref<1x16x64xf32, #tpu.memory_space<vmem>>, vector<1x16x64xf32>
    %1 = vector.shape_cast %0 : vector<1x16x64xf32> to vector<16x64xf32>
    %c0_2 = arith.constant 0 : index
    %c0_3 = arith.constant 0 : index
    %2 = vector.load %arg2[%c0_2, %c0_3] : memref<64x32xf32, #tpu.memory_space<vmem>>, vector<64x32xf32>
    %cst = arith.constant dense<0.000000e+00> : vector<16x32xf32>
    %3 = tpu.matmul %1, %2, %cst {dimension_numbers = #tpu.dot_dimension_numbers<[1], [0], [0], [1], [0, 0, 1, 1], [], []>} : vector<16x64xf32>, vector<64x32xf32>, vector<16x32xf32> -> vector<16x32xf32>
    %c0_4 = arith.constant 0 : index
    %c0_5 = arith.constant 0 : index
    %4 = vector.load %arg3[%c0_4, %c0_5] : memref<1x32xf32, #tpu.memory_space<vmem>>, vector<1x32xf32>
    %5 = vector.broadcast %4 : vector<1x32xf32> to vector<16x32xf32>
    %6 = arith.addf %3, %5 : vector<16x32xf32>
    %c0_6 = arith.constant 0 : index
    %c0_7 = arith.constant 0 : index
    %7 = vector.load %arg4[%c0_6, %c0_7] : memref<16x32xf32, #tpu.memory_space<vmem>>, vector<16x32xf32>
    %8 = arith.addf %6, %7 : vector<16x32xf32>
    %c0_8 = arith.constant 0 : index
    %c0_9 = arith.constant 0 : index
    %c0_10 = arith.constant 0 : index
    %9 = vector.load %arg5[%c0_8, %c0_9, %c0_10] : memref<2x1x32xf32, #tpu.memory_space<vmem>>, vector<1x1x32xf32>
    %10 = vector.shape_cast %9 : vector<1x1x32xf32> to vector<1x32xf32>
    %c0_11 = arith.constant 0 : index
    %c0_12 = arith.constant 0 : index
    %c0_13 = arith.constant 0 : index
    %11 = vector.load %arg6[%c0_11, %c0_12, %c0_13] : memref<2x1x32xf32, #tpu.memory_space<vmem>>, vector<1x1x32xf32>
    %12 = vector.shape_cast %11 : vector<1x1x32xf32> to vector<1x32xf32>
    %cst_14 = arith.constant dense<0.000000e+00> : vector<16xf32>
    %13 = vector.multi_reduction <add>, %8, %cst_14 [1] : vector<16x32xf32> to vector<16xf32>
    %14 = vector.shape_cast %13 : vector<16xf32> to vector<16x1xf32>
    %cst_15 = arith.constant 3.200000e+01 : f32
    %15 = vector.broadcast %cst_15 : f32 to vector<16x1xf32>
    %16 = arith.divf %14, %15 : vector<16x1xf32>
    %17 = vector.broadcast %16 : vector<16x1xf32> to vector<16x32xf32>
    %18 = arith.subf %8, %17 : vector<16x32xf32>
    %19 = vector.broadcast %16 : vector<16x1xf32> to vector<16x32xf32>
    %20 = arith.subf %8, %19 : vector<16x32xf32>
    %21 = arith.mulf %18, %20 : vector<16x32xf32>
    %cst_16 = arith.constant dense<0.000000e+00> : vector<16xf32>
    %22 = vector.multi_reduction <add>, %21, %cst_16 [1] : vector<16x32xf32> to vector<16xf32>
    %23 = vector.shape_cast %22 : vector<16xf32> to vector<16x1xf32>
    %cst_17 = arith.constant 3.200000e+01 : f32
    %24 = vector.broadcast %cst_17 : f32 to vector<16x1xf32>
    %25 = arith.divf %23, %24 : vector<16x1xf32>
    %26 = vector.broadcast %16 : vector<16x1xf32> to vector<16x32xf32>
    %27 = arith.subf %8, %26 : vector<16x32xf32>
    %cst_18 = arith.constant 9.99999974E-6 : f32
    %28 = vector.broadcast %cst_18 : f32 to vector<16x1xf32>
    %29 = arith.addf %25, %28 : vector<16x1xf32>
    %30 = math.rsqrt %29 : vector<16x1xf32>
    %31 = vector.broadcast %30 : vector<16x1xf32> to vector<16x32xf32>
    %32 = arith.mulf %27, %31 : vector<16x32xf32>
    %33 = vector.broadcast %10 : vector<1x32xf32> to vector<16x32xf32>
    %34 = arith.mulf %32, %33 : vector<16x32xf32>
    %35 = vector.broadcast %12 : vector<1x32xf32> to vector<16x32xf32>
    %36 = arith.addf %34, %35 : vector<16x32xf32>
    %c0_19 = arith.constant 0 : index
    %c0_20 = arith.constant 0 : index
    %c0_21 = arith.constant 0 : index
    %37 = vector.load %arg7[%c0_19, %c0_20, %c0_21] : memref<2x32x96xf32, #tpu.memory_space<vmem>>, vector<1x32x96xf32>
    %38 = vector.shape_cast %37 : vector<1x32x96xf32> to vector<32x96xf32>
    %cst_22 = arith.constant dense<0.000000e+00> : vector<16x96xf32>
    %39 = tpu.matmul %36, %38, %cst_22 {dimension_numbers = #tpu.dot_dimension_numbers<[1], [0], [0], [1], [0, 0, 1, 1], [], []>} : vector<16x32xf32>, vector<32x96xf32>, vector<16x96xf32> -> vector<16x96xf32>
    %40 = vector.extract_strided_slice %39 {offsets = [0, 0], sizes = [16, 8], strides = [1, 1]} : vector<16x96xf32> to vector<16x8xf32>
    %41 = vector.extract_strided_slice %39 {offsets = [0, 8], sizes = [16, 8], strides = [1, 1]} : vector<16x96xf32> to vector<16x8xf32>
    %42 = vector.extract_strided_slice %39 {offsets = [0, 16], sizes = [16, 8], strides = [1, 1]} : vector<16x96xf32> to vector<16x8xf32>
    %43 = vector.extract_strided_slice %39 {offsets = [0, 24], sizes = [16, 8], strides = [1, 1]} : vector<16x96xf32> to vector<16x8xf32>
    %44 = vector.shape_cast %40 : vector<16x8xf32> to vector<1x16x8xf32>
    %45 = vector.shape_cast %41 : vector<16x8xf32> to vector<1x16x8xf32>
    %46 = vector.shape_cast %42 : vector<16x8xf32> to vector<1x16x8xf32>
    %47 = vector.shape_cast %43 : vector<16x8xf32> to vector<1x16x8xf32>
    %48 = tpu.concatenate %44, %45, %46, %47 in 0 : vector<1x16x8xf32>, vector<1x16x8xf32>, vector<1x16x8xf32>, vector<1x16x8xf32> -> vector<4x16x8xf32>
    %49 = vector.extract_strided_slice %39 {offsets = [0, 32], sizes = [16, 8], strides = [1, 1]} : vector<16x96xf32> to vector<16x8xf32>
    %50 = vector.extract_strided_slice %39 {offsets = [0, 40], sizes = [16, 8], strides = [1, 1]} : vector<16x96xf32> to vector<16x8xf32>
    %51 = vector.extract_strided_slice %39 {offsets = [0, 48], sizes = [16, 8], strides = [1, 1]} : vector<16x96xf32> to vector<16x8xf32>
    %52 = vector.extract_strided_slice %39 {offsets = [0, 56], sizes = [16, 8], strides = [1, 1]} : vector<16x96xf32> to vector<16x8xf32>
    %53 = vector.shape_cast %49 : vector<16x8xf32> to vector<1x16x8xf32>
    %54 = vector.shape_cast %50 : vector<16x8xf32> to vector<1x16x8xf32>
    %55 = vector.shape_cast %51 : vector<16x8xf32> to vector<1x16x8xf32>
    %56 = vector.shape_cast %52 : vector<16x8xf32> to vector<1x16x8xf32>
    %57 = tpu.concatenate %53, %54, %55, %56 in 0 : vector<1x16x8xf32>, vector<1x16x8xf32>, vector<1x16x8xf32>, vector<1x16x8xf32> -> vector<4x16x8xf32>
    %58 = vector.extract_strided_slice %39 {offsets = [0, 64], sizes = [16, 8], strides = [1, 1]} : vector<16x96xf32> to vector<16x8xf32>
    %59 = vector.extract_strided_slice %39 {offsets = [0, 72], sizes = [16, 8], strides = [1, 1]} : vector<16x96xf32> to vector<16x8xf32>
    %60 = vector.extract_strided_slice %39 {offsets = [0, 80], sizes = [16, 8], strides = [1, 1]} : vector<16x96xf32> to vector<16x8xf32>
    %61 = vector.extract_strided_slice %39 {offsets = [0, 88], sizes = [16, 8], strides = [1, 1]} : vector<16x96xf32> to vector<16x8xf32>
    %62 = vector.shape_cast %58 : vector<16x8xf32> to vector<1x16x8xf32>
    %63 = vector.shape_cast %59 : vector<16x8xf32> to vector<1x16x8xf32>
    %64 = vector.shape_cast %60 : vector<16x8xf32> to vector<1x16x8xf32>
    %65 = vector.shape_cast %61 : vector<16x8xf32> to vector<1x16x8xf32>
    %66 = tpu.concatenate %62, %63, %64, %65 in 0 : vector<1x16x8xf32>, vector<1x16x8xf32>, vector<1x16x8xf32>, vector<1x16x8xf32> -> vector<4x16x8xf32>
    "tpu.trace_start"() <{level = 10 : i32, message = "hqd,hkd->hqk"}> : () -> ()
    %cst_23 = arith.constant dense<0.000000e+00> : vector<4x16x16xf32>
    %67 = tpu.matmul %48, %57, %cst_23 {dimension_numbers = #tpu.dot_dimension_numbers<[2], [2], [1], [1], [0, 0, 0, 1, 1, 1], [0], [0]>} : vector<4x16x8xf32>, vector<4x16x8xf32>, vector<4x16x16xf32> -> vector<4x16x16xf32>
    "tpu.trace_stop"() : () -> ()
    %cst_24 = arith.constant 0.353553385 : f32
    %68 = vector.broadcast %cst_24 : f32 to vector<4x16x16xf32>
    %69 = arith.mulf %67, %68 : vector<4x16x16xf32>
    %cst_25 = arith.constant dense<0xFF800000> : vector<4x16xf32>
    %70 = vector.multi_reduction <maximumf>, %69, %cst_25 [2] : vector<4x16x16xf32> to vector<4x16xf32>
    %71 = vector.shape_cast %70 : vector<4x16xf32> to vector<4x16x1xf32>
    %72 = vector.broadcast %71 : vector<4x16x1xf32> to vector<4x16x16xf32>
    %73 = arith.subf %69, %72 : vector<4x16x16xf32>
    %74 = math.exp %73 : vector<4x16x16xf32>
    %cst_26 = arith.constant dense<0.000000e+00> : vector<4x16xf32>
    %75 = vector.multi_reduction <add>, %74, %cst_26 [2] : vector<4x16x16xf32> to vector<4x16xf32>
    %76 = vector.shape_cast %75 : vector<4x16xf32> to vector<4x16x1xf32>
    %77 = tpu.reciprocal %76 {approx = true} : vector<4x16x1xf32> -> vector<4x16x1xf32>
    %78 = vector.broadcast %77 : vector<4x16x1xf32> to vector<4x16x16xf32>
    %79 = arith.mulf %74, %78 : vector<4x16x16xf32>
    "tpu.trace_start"() <{level = 10 : i32, message = "hqk,hkd->hqd"}> : () -> ()
    %cst_27 = arith.constant dense<0.000000e+00> : vector<4x16x8xf32>
    %80 = tpu.matmul %79, %66, %cst_27 {dimension_numbers = #tpu.dot_dimension_numbers<[2], [1], [1], [2], [0, 0, 0, 1, 1, 2], [0], [0]>} : vector<4x16x16xf32>, vector<4x16x8xf32>, vector<4x16x8xf32> -> vector<4x16x8xf32>
    "tpu.trace_stop"() : () -> ()
    %c0_28 = arith.constant 0 : index
    %c0_29 = arith.constant 0 : index
    %c0_30 = arith.constant 0 : index
    %c0_31 = arith.constant 0 : index
    %81 = vector.load %arg8[%c0_28, %c0_29, %c0_30, %c0_31] : memref<2x4x8x32xf32, #tpu.memory_space<vmem>>, vector<1x4x8x32xf32>
    %82 = vector.shape_cast %81 : vector<1x4x8x32xf32> to vector<4x8x32xf32>
    "tpu.trace_start"() <{level = 10 : i32, message = "hqd,hdo->hqo"}> : () -> ()
    %cst_32 = arith.constant dense<0.000000e+00> : vector<4x16x32xf32>
    %83 = tpu.matmul %80, %82, %cst_32 {dimension_numbers = #tpu.dot_dimension_numbers<[2], [1], [1], [2], [0, 0, 0, 1, 1, 2], [0], [0]>} : vector<4x16x8xf32>, vector<4x8x32xf32>, vector<4x16x32xf32> -> vector<4x16x32xf32>
    "tpu.trace_stop"() : () -> ()
    %cst_33 = arith.constant dense<0.000000e+00> : vector<16x32xf32>
    %84 = vector.multi_reduction <add>, %83, %cst_33 [0] : vector<4x16x32xf32> to vector<16x32xf32>
    %c0_34 = arith.constant 0 : index
    %c0_35 = arith.constant 0 : index
    %c0_36 = arith.constant 0 : index
    %85 = vector.load %arg9[%c0_34, %c0_35, %c0_36] : memref<2x1x32xf32, #tpu.memory_space<vmem>>, vector<1x1x32xf32>
    %86 = vector.shape_cast %85 : vector<1x1x32xf32> to vector<1x32xf32>
    %87 = vector.broadcast %86 : vector<1x32xf32> to vector<16x32xf32>
    %88 = arith.addf %84, %87 : vector<16x32xf32>
    %89 = arith.addf %8, %88 : vector<16x32xf32>
    %c0_37 = arith.constant 0 : index
    %c0_38 = arith.constant 0 : index
    %c0_39 = arith.constant 0 : index
    %90 = vector.load %arg10[%c0_37, %c0_38, %c0_39] : memref<2x1x32xf32, #tpu.memory_space<vmem>>, vector<1x1x32xf32>
    %91 = vector.shape_cast %90 : vector<1x1x32xf32> to vector<1x32xf32>
    %c0_40 = arith.constant 0 : index
    %c0_41 = arith.constant 0 : index
    %c0_42 = arith.constant 0 : index
    %92 = vector.load %arg11[%c0_40, %c0_41, %c0_42] : memref<2x1x32xf32, #tpu.memory_space<vmem>>, vector<1x1x32xf32>
    %93 = vector.shape_cast %92 : vector<1x1x32xf32> to vector<1x32xf32>
    %cst_43 = arith.constant dense<0.000000e+00> : vector<16xf32>
    %94 = vector.multi_reduction <add>, %89, %cst_43 [1] : vector<16x32xf32> to vector<16xf32>
    %95 = vector.shape_cast %94 : vector<16xf32> to vector<16x1xf32>
    %cst_44 = arith.constant 3.200000e+01 : f32
    %96 = vector.broadcast %cst_44 : f32 to vector<16x1xf32>
    %97 = arith.divf %95, %96 : vector<16x1xf32>
    %98 = vector.broadcast %97 : vector<16x1xf32> to vector<16x32xf32>
    %99 = arith.subf %89, %98 : vector<16x32xf32>
    %100 = vector.broadcast %97 : vector<16x1xf32> to vector<16x32xf32>
    %101 = arith.subf %89, %100 : vector<16x32xf32>
    %102 = arith.mulf %99, %101 : vector<16x32xf32>
    %cst_45 = arith.constant dense<0.000000e+00> : vector<16xf32>
    %103 = vector.multi_reduction <add>, %102, %cst_45 [1] : vector<16x32xf32> to vector<16xf32>
    %104 = vector.shape_cast %103 : vector<16xf32> to vector<16x1xf32>
    %cst_46 = arith.constant 3.200000e+01 : f32
    %105 = vector.broadcast %cst_46 : f32 to vector<16x1xf32>
    %106 = arith.divf %104, %105 : vector<16x1xf32>
    %107 = vector.broadcast %97 : vector<16x1xf32> to vector<16x32xf32>
    %108 = arith.subf %89, %107 : vector<16x32xf32>
    %cst_47 = arith.constant 9.99999974E-6 : f32
    %109 = vector.broadcast %cst_47 : f32 to vector<16x1xf32>
    %110 = arith.addf %106, %109 : vector<16x1xf32>
    %111 = math.rsqrt %110 : vector<16x1xf32>
    %112 = vector.broadcast %111 : vector<16x1xf32> to vector<16x32xf32>
    %113 = arith.mulf %108, %112 : vector<16x32xf32>
    %114 = vector.broadcast %91 : vector<1x32xf32> to vector<16x32xf32>
    %115 = arith.mulf %113, %114 : vector<16x32xf32>
    %116 = vector.broadcast %93 : vector<1x32xf32> to vector<16x32xf32>
    %117 = arith.addf %115, %116 : vector<16x32xf32>
    %c0_48 = arith.constant 0 : index
    %c0_49 = arith.constant 0 : index
    %c0_50 = arith.constant 0 : index
    %118 = vector.load %arg12[%c0_48, %c0_49, %c0_50] : memref<2x32x64xf32, #tpu.memory_space<vmem>>, vector<1x32x64xf32>
    %119 = vector.shape_cast %118 : vector<1x32x64xf32> to vector<32x64xf32>
    %cst_51 = arith.constant dense<0.000000e+00> : vector<16x64xf32>
    %120 = tpu.matmul %117, %119, %cst_51 {dimension_numbers = #tpu.dot_dimension_numbers<[1], [0], [0], [1], [0, 0, 1, 1], [], []>} : vector<16x32xf32>, vector<32x64xf32>, vector<16x64xf32> -> vector<16x64xf32>
    %c0_52 = arith.constant 0 : index
    %c0_53 = arith.constant 0 : index
    %c0_54 = arith.constant 0 : index
    %121 = vector.load %arg13[%c0_52, %c0_53, %c0_54] : memref<2x1x64xf32, #tpu.memory_space<vmem>>, vector<1x1x64xf32>
    %122 = vector.shape_cast %121 : vector<1x1x64xf32> to vector<1x64xf32>
    %123 = vector.broadcast %122 : vector<1x64xf32> to vector<16x64xf32>
    %124 = arith.addf %120, %123 : vector<16x64xf32>
    %cst_55 = arith.constant 5.000000e-01 : f32
    %125 = vector.broadcast %cst_55 : f32 to vector<16x64xf32>
    %126 = arith.mulf %125, %124 : vector<16x64xf32>
    %cst_56 = arith.constant 0.707106769 : f32
    %127 = vector.broadcast %cst_56 : f32 to vector<16x64xf32>
    %128 = arith.mulf %124, %127 : vector<16x64xf32>
    %129 = math.absf %128 : vector<16x64xf32>
    %cst_57 = arith.constant 0.327591091 : f32
    %130 = vector.broadcast %cst_57 : f32 to vector<16x64xf32>
    %131 = arith.mulf %130, %129 : vector<16x64xf32>
    %cst_58 = arith.constant 1.000000e+00 : f32
    %132 = vector.broadcast %cst_58 : f32 to vector<16x64xf32>
    %133 = arith.addf %132, %131 : vector<16x64xf32>
    %cst_59 = arith.constant 1.000000e+00 : f32
    %134 = vector.broadcast %cst_59 : f32 to vector<16x64xf32>
    %135 = arith.divf %134, %133 : vector<16x64xf32>
    %cst_60 = arith.constant 1.06140542 : f32
    %136 = vector.broadcast %cst_60 : f32 to vector<16x64xf32>
    %137 = arith.mulf %136, %135 : vector<16x64xf32>
    %cst_61 = arith.constant -1.45315206 : f32
    %138 = vector.broadcast %cst_61 : f32 to vector<16x64xf32>
    %139 = arith.addf %137, %138 : vector<16x64xf32>
    %140 = arith.mulf %139, %135 : vector<16x64xf32>
    %cst_62 = arith.constant 1.42141378 : f32
    %141 = vector.broadcast %cst_62 : f32 to vector<16x64xf32>
    %142 = arith.addf %140, %141 : vector<16x64xf32>
    %143 = arith.mulf %142, %135 : vector<16x64xf32>
    %cst_63 = arith.constant -0.284496725 : f32
    %144 = vector.broadcast %cst_63 : f32 to vector<16x64xf32>
    %145 = arith.addf %143, %144 : vector<16x64xf32>
    %146 = arith.mulf %145, %135 : vector<16x64xf32>
    %cst_64 = arith.constant 0.254829586 : f32
    %147 = vector.broadcast %cst_64 : f32 to vector<16x64xf32>
    %148 = arith.addf %146, %147 : vector<16x64xf32>
    %149 = arith.mulf %148, %135 : vector<16x64xf32>
    %cst_65 = arith.constant 0.000000e+00 : f32
    %150 = vector.broadcast %cst_65 : f32 to vector<16x64xf32>
    %151 = arith.subf %150, %129 : vector<16x64xf32>
    %152 = arith.mulf %151, %129 : vector<16x64xf32>
    %153 = math.exp %152 : vector<16x64xf32>
    %154 = arith.mulf %149, %153 : vector<16x64xf32>
    %cst_66 = arith.constant 1.000000e+00 : f32
    %155 = vector.broadcast %cst_66 : f32 to vector<16x64xf32>
    %156 = arith.subf %155, %154 : vector<16x64xf32>
    %cst_67 = arith.constant 0.000000e+00 : f32
    %157 = vector.broadcast %cst_67 : f32 to vector<16x64xf32>
    %158 = arith.cmpf oge, %128, %157 : vector<16x64xf32>
    %cst_68 = arith.constant 0.000000e+00 : f32
    %159 = vector.broadcast %cst_68 : f32 to vector<16x64xf32>
    %160 = arith.subf %159, %156 : vector<16x64xf32>
    %161 = arith.select %158, %156, %160 : vector<16x64xi1>, vector<16x64xf32>
    %cst_69 = arith.constant 1.000000e+00 : f32
    %162 = vector.broadcast %cst_69 : f32 to vector<16x64xf32>
    %163 = arith.addf %162, %161 : vector<16x64xf32>
    %164 = arith.mulf %126, %163 : vector<16x64xf32>
    %c0_70 = arith.constant 0 : index
    %c0_71 = arith.constant 0 : index
    %c0_72 = arith.constant 0 : index
    %165 = vector.load %arg14[%c0_70, %c0_71, %c0_72] : memref<2x64x32xf32, #tpu.memory_space<vmem>>, vector<1x64x32xf32>
    %166 = vector.shape_cast %165 : vector<1x64x32xf32> to vector<64x32xf32>
    %cst_73 = arith.constant dense<0.000000e+00> : vector<16x32xf32>
    %167 = tpu.matmul %164, %166, %cst_73 {dimension_numbers = #tpu.dot_dimension_numbers<[1], [0], [0], [1], [0, 0, 1, 1], [], []>} : vector<16x64xf32>, vector<64x32xf32>, vector<16x32xf32> -> vector<16x32xf32>
    %168 = arith.addf %89, %167 : vector<16x32xf32>
    %c0_74 = arith.constant 0 : index
    %c0_75 = arith.constant 0 : index
    %c0_76 = arith.constant 0 : index
    %169 = vector.load %arg15[%c0_74, %c0_75, %c0_76] : memref<2x1x32xf32, #tpu.memory_space<vmem>>, vector<1x1x32xf32>
    %170 = vector.shape_cast %169 : vector<1x1x32xf32> to vector<1x32xf32>
    %171 = vector.broadcast %170 : vector<1x32xf32> to vector<16x32xf32>
    %172 = arith.addf %168, %171 : vector<16x32xf32>
    %c1 = arith.constant 1 : index
    %c0_77 = arith.constant 0 : index
    %c0_78 = arith.constant 0 : index
    %173 = vector.load %arg5[%c1, %c0_77, %c0_78] : memref<2x1x32xf32, #tpu.memory_space<vmem>>, vector<1x1x32xf32>
    %174 = vector.shape_cast %173 : vector<1x1x32xf32> to vector<1x32xf32>
    %c1_79 = arith.constant 1 : index
    %c0_80 = arith.constant 0 : index
    %c0_81 = arith.constant 0 : index
    %175 = vector.load %arg6[%c1_79, %c0_80, %c0_81] : memref<2x1x32xf32, #tpu.memory_space<vmem>>, vector<1x1x32xf32>
    %176 = vector.shape_cast %175 : vector<1x1x32xf32> to vector<1x32xf32>
    %cst_82 = arith.constant dense<0.000000e+00> : vector<16xf32>
    %177 = vector.multi_reduction <add>, %172, %cst_82 [1] : vector<16x32xf32> to vector<16xf32>
    %178 = vector.shape_cast %177 : vector<16xf32> to vector<16x1xf32>
    %cst_83 = arith.constant 3.200000e+01 : f32
    %179 = vector.broadcast %cst_83 : f32 to vector<16x1xf32>
    %180 = arith.divf %178, %179 : vector<16x1xf32>
    %181 = vector.broadcast %180 : vector<16x1xf32> to vector<16x32xf32>
    %182 = arith.subf %172, %181 : vector<16x32xf32>
    %183 = vector.broadcast %180 : vector<16x1xf32> to vector<16x32xf32>
    %184 = arith.subf %172, %183 : vector<16x32xf32>
    %185 = arith.mulf %182, %184 : vector<16x32xf32>
    %cst_84 = arith.constant dense<0.000000e+00> : vector<16xf32>
    %186 = vector.multi_reduction <add>, %185, %cst_84 [1] : vector<16x32xf32> to vector<16xf32>
    %187 = vector.shape_cast %186 : vector<16xf32> to vector<16x1xf32>
    %cst_85 = arith.constant 3.200000e+01 : f32
    %188 = vector.broadcast %cst_85 : f32 to vector<16x1xf32>
    %189 = arith.divf %187, %188 : vector<16x1xf32>
    %190 = vector.broadcast %180 : vector<16x1xf32> to vector<16x32xf32>
    %191 = arith.subf %172, %190 : vector<16x32xf32>
    %cst_86 = arith.constant 9.99999974E-6 : f32
    %192 = vector.broadcast %cst_86 : f32 to vector<16x1xf32>
    %193 = arith.addf %189, %192 : vector<16x1xf32>
    %194 = math.rsqrt %193 : vector<16x1xf32>
    %195 = vector.broadcast %194 : vector<16x1xf32> to vector<16x32xf32>
    %196 = arith.mulf %191, %195 : vector<16x32xf32>
    %197 = vector.broadcast %174 : vector<1x32xf32> to vector<16x32xf32>
    %198 = arith.mulf %196, %197 : vector<16x32xf32>
    %199 = vector.broadcast %176 : vector<1x32xf32> to vector<16x32xf32>
    %200 = arith.addf %198, %199 : vector<16x32xf32>
    %c1_87 = arith.constant 1 : index
    %c0_88 = arith.constant 0 : index
    %c0_89 = arith.constant 0 : index
    %201 = vector.load %arg7[%c1_87, %c0_88, %c0_89] : memref<2x32x96xf32, #tpu.memory_space<vmem>>, vector<1x32x96xf32>
    %202 = vector.shape_cast %201 : vector<1x32x96xf32> to vector<32x96xf32>
    %cst_90 = arith.constant dense<0.000000e+00> : vector<16x96xf32>
    %203 = tpu.matmul %200, %202, %cst_90 {dimension_numbers = #tpu.dot_dimension_numbers<[1], [0], [0], [1], [0, 0, 1, 1], [], []>} : vector<16x32xf32>, vector<32x96xf32>, vector<16x96xf32> -> vector<16x96xf32>
    %204 = vector.extract_strided_slice %203 {offsets = [0, 0], sizes = [16, 8], strides = [1, 1]} : vector<16x96xf32> to vector<16x8xf32>
    %205 = vector.extract_strided_slice %203 {offsets = [0, 8], sizes = [16, 8], strides = [1, 1]} : vector<16x96xf32> to vector<16x8xf32>
    %206 = vector.extract_strided_slice %203 {offsets = [0, 16], sizes = [16, 8], strides = [1, 1]} : vector<16x96xf32> to vector<16x8xf32>
    %207 = vector.extract_strided_slice %203 {offsets = [0, 24], sizes = [16, 8], strides = [1, 1]} : vector<16x96xf32> to vector<16x8xf32>
    %208 = vector.shape_cast %204 : vector<16x8xf32> to vector<1x16x8xf32>
    %209 = vector.shape_cast %205 : vector<16x8xf32> to vector<1x16x8xf32>
    %210 = vector.shape_cast %206 : vector<16x8xf32> to vector<1x16x8xf32>
    %211 = vector.shape_cast %207 : vector<16x8xf32> to vector<1x16x8xf32>
    %212 = tpu.concatenate %208, %209, %210, %211 in 0 : vector<1x16x8xf32>, vector<1x16x8xf32>, vector<1x16x8xf32>, vector<1x16x8xf32> -> vector<4x16x8xf32>
    %213 = vector.extract_strided_slice %203 {offsets = [0, 32], sizes = [16, 8], strides = [1, 1]} : vector<16x96xf32> to vector<16x8xf32>
    %214 = vector.extract_strided_slice %203 {offsets = [0, 40], sizes = [16, 8], strides = [1, 1]} : vector<16x96xf32> to vector<16x8xf32>
    %215 = vector.extract_strided_slice %203 {offsets = [0, 48], sizes = [16, 8], strides = [1, 1]} : vector<16x96xf32> to vector<16x8xf32>
    %216 = vector.extract_strided_slice %203 {offsets = [0, 56], sizes = [16, 8], strides = [1, 1]} : vector<16x96xf32> to vector<16x8xf32>
    %217 = vector.shape_cast %213 : vector<16x8xf32> to vector<1x16x8xf32>
    %218 = vector.shape_cast %214 : vector<16x8xf32> to vector<1x16x8xf32>
    %219 = vector.shape_cast %215 : vector<16x8xf32> to vector<1x16x8xf32>
    %220 = vector.shape_cast %216 : vector<16x8xf32> to vector<1x16x8xf32>
    %221 = tpu.concatenate %217, %218, %219, %220 in 0 : vector<1x16x8xf32>, vector<1x16x8xf32>, vector<1x16x8xf32>, vector<1x16x8xf32> -> vector<4x16x8xf32>
    %222 = vector.extract_strided_slice %203 {offsets = [0, 64], sizes = [16, 8], strides = [1, 1]} : vector<16x96xf32> to vector<16x8xf32>
    %223 = vector.extract_strided_slice %203 {offsets = [0, 72], sizes = [16, 8], strides = [1, 1]} : vector<16x96xf32> to vector<16x8xf32>
    %224 = vector.extract_strided_slice %203 {offsets = [0, 80], sizes = [16, 8], strides = [1, 1]} : vector<16x96xf32> to vector<16x8xf32>
    %225 = vector.extract_strided_slice %203 {offsets = [0, 88], sizes = [16, 8], strides = [1, 1]} : vector<16x96xf32> to vector<16x8xf32>
    %226 = vector.shape_cast %222 : vector<16x8xf32> to vector<1x16x8xf32>
    %227 = vector.shape_cast %223 : vector<16x8xf32> to vector<1x16x8xf32>
    %228 = vector.shape_cast %224 : vector<16x8xf32> to vector<1x16x8xf32>
    %229 = vector.shape_cast %225 : vector<16x8xf32> to vector<1x16x8xf32>
    %230 = tpu.concatenate %226, %227, %228, %229 in 0 : vector<1x16x8xf32>, vector<1x16x8xf32>, vector<1x16x8xf32>, vector<1x16x8xf32> -> vector<4x16x8xf32>
    "tpu.trace_start"() <{level = 10 : i32, message = "hqd,hkd->hqk"}> : () -> ()
    %cst_91 = arith.constant dense<0.000000e+00> : vector<4x16x16xf32>
    %231 = tpu.matmul %212, %221, %cst_91 {dimension_numbers = #tpu.dot_dimension_numbers<[2], [2], [1], [1], [0, 0, 0, 1, 1, 1], [0], [0]>} : vector<4x16x8xf32>, vector<4x16x8xf32>, vector<4x16x16xf32> -> vector<4x16x16xf32>
    "tpu.trace_stop"() : () -> ()
    %cst_92 = arith.constant 0.353553385 : f32
    %232 = vector.broadcast %cst_92 : f32 to vector<4x16x16xf32>
    %233 = arith.mulf %231, %232 : vector<4x16x16xf32>
    %cst_93 = arith.constant dense<0xFF800000> : vector<4x16xf32>
    %234 = vector.multi_reduction <maximumf>, %233, %cst_93 [2] : vector<4x16x16xf32> to vector<4x16xf32>
    %235 = vector.shape_cast %234 : vector<4x16xf32> to vector<4x16x1xf32>
    %236 = vector.broadcast %235 : vector<4x16x1xf32> to vector<4x16x16xf32>
    %237 = arith.subf %233, %236 : vector<4x16x16xf32>
    %238 = math.exp %237 : vector<4x16x16xf32>
    %cst_94 = arith.constant dense<0.000000e+00> : vector<4x16xf32>
    %239 = vector.multi_reduction <add>, %238, %cst_94 [2] : vector<4x16x16xf32> to vector<4x16xf32>
    %240 = vector.shape_cast %239 : vector<4x16xf32> to vector<4x16x1xf32>
    %241 = tpu.reciprocal %240 {approx = true} : vector<4x16x1xf32> -> vector<4x16x1xf32>
    %242 = vector.broadcast %241 : vector<4x16x1xf32> to vector<4x16x16xf32>
    %243 = arith.mulf %238, %242 : vector<4x16x16xf32>
    "tpu.trace_start"() <{level = 10 : i32, message = "hqk,hkd->hqd"}> : () -> ()
    %cst_95 = arith.constant dense<0.000000e+00> : vector<4x16x8xf32>
    %244 = tpu.matmul %243, %230, %cst_95 {dimension_numbers = #tpu.dot_dimension_numbers<[2], [1], [1], [2], [0, 0, 0, 1, 1, 2], [0], [0]>} : vector<4x16x16xf32>, vector<4x16x8xf32>, vector<4x16x8xf32> -> vector<4x16x8xf32>
    "tpu.trace_stop"() : () -> ()
    %c1_96 = arith.constant 1 : index
    %c0_97 = arith.constant 0 : index
    %c0_98 = arith.constant 0 : index
    %c0_99 = arith.constant 0 : index
    %245 = vector.load %arg8[%c1_96, %c0_97, %c0_98, %c0_99] : memref<2x4x8x32xf32, #tpu.memory_space<vmem>>, vector<1x4x8x32xf32>
    %246 = vector.shape_cast %245 : vector<1x4x8x32xf32> to vector<4x8x32xf32>
    "tpu.trace_start"() <{level = 10 : i32, message = "hqd,hdo->hqo"}> : () -> ()
    %cst_100 = arith.constant dense<0.000000e+00> : vector<4x16x32xf32>
    %247 = tpu.matmul %244, %246, %cst_100 {dimension_numbers = #tpu.dot_dimension_numbers<[2], [1], [1], [2], [0, 0, 0, 1, 1, 2], [0], [0]>} : vector<4x16x8xf32>, vector<4x8x32xf32>, vector<4x16x32xf32> -> vector<4x16x32xf32>
    "tpu.trace_stop"() : () -> ()
    %cst_101 = arith.constant dense<0.000000e+00> : vector<16x32xf32>
    %248 = vector.multi_reduction <add>, %247, %cst_101 [0] : vector<4x16x32xf32> to vector<16x32xf32>
    %c1_102 = arith.constant 1 : index
    %c0_103 = arith.constant 0 : index
    %c0_104 = arith.constant 0 : index
    %249 = vector.load %arg9[%c1_102, %c0_103, %c0_104] : memref<2x1x32xf32, #tpu.memory_space<vmem>>, vector<1x1x32xf32>
    %250 = vector.shape_cast %249 : vector<1x1x32xf32> to vector<1x32xf32>
    %251 = vector.broadcast %250 : vector<1x32xf32> to vector<16x32xf32>
    %252 = arith.addf %248, %251 : vector<16x32xf32>
    %253 = arith.addf %172, %252 : vector<16x32xf32>
    %c1_105 = arith.constant 1 : index
    %c0_106 = arith.constant 0 : index
    %c0_107 = arith.constant 0 : index
    %254 = vector.load %arg10[%c1_105, %c0_106, %c0_107] : memref<2x1x32xf32, #tpu.memory_space<vmem>>, vector<1x1x32xf32>
    %255 = vector.shape_cast %254 : vector<1x1x32xf32> to vector<1x32xf32>
    %c1_108 = arith.constant 1 : index
    %c0_109 = arith.constant 0 : index
    %c0_110 = arith.constant 0 : index
    %256 = vector.load %arg11[%c1_108, %c0_109, %c0_110] : memref<2x1x32xf32, #tpu.memory_space<vmem>>, vector<1x1x32xf32>
    %257 = vector.shape_cast %256 : vector<1x1x32xf32> to vector<1x32xf32>
    %cst_111 = arith.constant dense<0.000000e+00> : vector<16xf32>
    %258 = vector.multi_reduction <add>, %253, %cst_111 [1] : vector<16x32xf32> to vector<16xf32>
    %259 = vector.shape_cast %258 : vector<16xf32> to vector<16x1xf32>
    %cst_112 = arith.constant 3.200000e+01 : f32
    %260 = vector.broadcast %cst_112 : f32 to vector<16x1xf32>
    %261 = arith.divf %259, %260 : vector<16x1xf32>
    %262 = vector.broadcast %261 : vector<16x1xf32> to vector<16x32xf32>
    %263 = arith.subf %253, %262 : vector<16x32xf32>
    %264 = vector.broadcast %261 : vector<16x1xf32> to vector<16x32xf32>
    %265 = arith.subf %253, %264 : vector<16x32xf32>
    %266 = arith.mulf %263, %265 : vector<16x32xf32>
    %cst_113 = arith.constant dense<0.000000e+00> : vector<16xf32>
    %267 = vector.multi_reduction <add>, %266, %cst_113 [1] : vector<16x32xf32> to vector<16xf32>
    %268 = vector.shape_cast %267 : vector<16xf32> to vector<16x1xf32>
    %cst_114 = arith.constant 3.200000e+01 : f32
    %269 = vector.broadcast %cst_114 : f32 to vector<16x1xf32>
    %270 = arith.divf %268, %269 : vector<16x1xf32>
    %271 = vector.broadcast %261 : vector<16x1xf32> to vector<16x32xf32>
    %272 = arith.subf %253, %271 : vector<16x32xf32>
    %cst_115 = arith.constant 9.99999974E-6 : f32
    %273 = vector.broadcast %cst_115 : f32 to vector<16x1xf32>
    %274 = arith.addf %270, %273 : vector<16x1xf32>
    %275 = math.rsqrt %274 : vector<16x1xf32>
    %276 = vector.broadcast %275 : vector<16x1xf32> to vector<16x32xf32>
    %277 = arith.mulf %272, %276 : vector<16x32xf32>
    %278 = vector.broadcast %255 : vector<1x32xf32> to vector<16x32xf32>
    %279 = arith.mulf %277, %278 : vector<16x32xf32>
    %280 = vector.broadcast %257 : vector<1x32xf32> to vector<16x32xf32>
    %281 = arith.addf %279, %280 : vector<16x32xf32>
    %c1_116 = arith.constant 1 : index
    %c0_117 = arith.constant 0 : index
    %c0_118 = arith.constant 0 : index
    %282 = vector.load %arg12[%c1_116, %c0_117, %c0_118] : memref<2x32x64xf32, #tpu.memory_space<vmem>>, vector<1x32x64xf32>
    %283 = vector.shape_cast %282 : vector<1x32x64xf32> to vector<32x64xf32>
    %cst_119 = arith.constant dense<0.000000e+00> : vector<16x64xf32>
    %284 = tpu.matmul %281, %283, %cst_119 {dimension_numbers = #tpu.dot_dimension_numbers<[1], [0], [0], [1], [0, 0, 1, 1], [], []>} : vector<16x32xf32>, vector<32x64xf32>, vector<16x64xf32> -> vector<16x64xf32>
    %c1_120 = arith.constant 1 : index
    %c0_121 = arith.constant 0 : index
    %c0_122 = arith.constant 0 : index
    %285 = vector.load %arg13[%c1_120, %c0_121, %c0_122] : memref<2x1x64xf32, #tpu.memory_space<vmem>>, vector<1x1x64xf32>
    %286 = vector.shape_cast %285 : vector<1x1x64xf32> to vector<1x64xf32>
    %287 = vector.broadcast %286 : vector<1x64xf32> to vector<16x64xf32>
    %288 = arith.addf %284, %287 : vector<16x64xf32>
    %cst_123 = arith.constant 5.000000e-01 : f32
    %289 = vector.broadcast %cst_123 : f32 to vector<16x64xf32>
    %290 = arith.mulf %289, %288 : vector<16x64xf32>
    %cst_124 = arith.constant 0.707106769 : f32
    %291 = vector.broadcast %cst_124 : f32 to vector<16x64xf32>
    %292 = arith.mulf %288, %291 : vector<16x64xf32>
    %293 = math.absf %292 : vector<16x64xf32>
    %cst_125 = arith.constant 0.327591091 : f32
    %294 = vector.broadcast %cst_125 : f32 to vector<16x64xf32>
    %295 = arith.mulf %294, %293 : vector<16x64xf32>
    %cst_126 = arith.constant 1.000000e+00 : f32
    %296 = vector.broadcast %cst_126 : f32 to vector<16x64xf32>
    %297 = arith.addf %296, %295 : vector<16x64xf32>
    %cst_127 = arith.constant 1.000000e+00 : f32
    %298 = vector.broadcast %cst_127 : f32 to vector<16x64xf32>
    %299 = arith.divf %298, %297 : vector<16x64xf32>
    %cst_128 = arith.constant 1.06140542 : f32
    %300 = vector.broadcast %cst_128 : f32 to vector<16x64xf32>
    %301 = arith.mulf %300, %299 : vector<16x64xf32>
    %cst_129 = arith.constant -1.45315206 : f32
    %302 = vector.broadcast %cst_129 : f32 to vector<16x64xf32>
    %303 = arith.addf %301, %302 : vector<16x64xf32>
    %304 = arith.mulf %303, %299 : vector<16x64xf32>
    %cst_130 = arith.constant 1.42141378 : f32
    %305 = vector.broadcast %cst_130 : f32 to vector<16x64xf32>
    %306 = arith.addf %304, %305 : vector<16x64xf32>
    %307 = arith.mulf %306, %299 : vector<16x64xf32>
    %cst_131 = arith.constant -0.284496725 : f32
    %308 = vector.broadcast %cst_131 : f32 to vector<16x64xf32>
    %309 = arith.addf %307, %308 : vector<16x64xf32>
    %310 = arith.mulf %309, %299 : vector<16x64xf32>
    %cst_132 = arith.constant 0.254829586 : f32
    %311 = vector.broadcast %cst_132 : f32 to vector<16x64xf32>
    %312 = arith.addf %310, %311 : vector<16x64xf32>
    %313 = arith.mulf %312, %299 : vector<16x64xf32>
    %cst_133 = arith.constant 0.000000e+00 : f32
    %314 = vector.broadcast %cst_133 : f32 to vector<16x64xf32>
    %315 = arith.subf %314, %293 : vector<16x64xf32>
    %316 = arith.mulf %315, %293 : vector<16x64xf32>
    %317 = math.exp %316 : vector<16x64xf32>
    %318 = arith.mulf %313, %317 : vector<16x64xf32>
    %cst_134 = arith.constant 1.000000e+00 : f32
    %319 = vector.broadcast %cst_134 : f32 to vector<16x64xf32>
    %320 = arith.subf %319, %318 : vector<16x64xf32>
    %cst_135 = arith.constant 0.000000e+00 : f32
    %321 = vector.broadcast %cst_135 : f32 to vector<16x64xf32>
    %322 = arith.cmpf oge, %292, %321 : vector<16x64xf32>
    %cst_136 = arith.constant 0.000000e+00 : f32
    %323 = vector.broadcast %cst_136 : f32 to vector<16x64xf32>
    %324 = arith.subf %323, %320 : vector<16x64xf32>
    %325 = arith.select %322, %320, %324 : vector<16x64xi1>, vector<16x64xf32>
    %cst_137 = arith.constant 1.000000e+00 : f32
    %326 = vector.broadcast %cst_137 : f32 to vector<16x64xf32>
    %327 = arith.addf %326, %325 : vector<16x64xf32>
    %328 = arith.mulf %290, %327 : vector<16x64xf32>
    %c1_138 = arith.constant 1 : index
    %c0_139 = arith.constant 0 : index
    %c0_140 = arith.constant 0 : index
    %329 = vector.load %arg14[%c1_138, %c0_139, %c0_140] : memref<2x64x32xf32, #tpu.memory_space<vmem>>, vector<1x64x32xf32>
    %330 = vector.shape_cast %329 : vector<1x64x32xf32> to vector<64x32xf32>
    %cst_141 = arith.constant dense<0.000000e+00> : vector<16x32xf32>
    %331 = tpu.matmul %328, %330, %cst_141 {dimension_numbers = #tpu.dot_dimension_numbers<[1], [0], [0], [1], [0, 0, 1, 1], [], []>} : vector<16x64xf32>, vector<64x32xf32>, vector<16x32xf32> -> vector<16x32xf32>
    %332 = arith.addf %253, %331 : vector<16x32xf32>
    %c1_142 = arith.constant 1 : index
    %c0_143 = arith.constant 0 : index
    %c0_144 = arith.constant 0 : index
    %333 = vector.load %arg15[%c1_142, %c0_143, %c0_144] : memref<2x1x32xf32, #tpu.memory_space<vmem>>, vector<1x1x32xf32>
    %334 = vector.shape_cast %333 : vector<1x1x32xf32> to vector<1x32xf32>
    %335 = vector.broadcast %334 : vector<1x32xf32> to vector<16x32xf32>
    %336 = arith.addf %332, %335 : vector<16x32xf32>
    %c0_145 = arith.constant 0 : index
    %c0_146 = arith.constant 0 : index
    %337 = vector.load %arg16[%c0_145, %c0_146] : memref<1x32xf32, #tpu.memory_space<vmem>>, vector<1x32xf32>
    %c0_147 = arith.constant 0 : index
    %c0_148 = arith.constant 0 : index
    %338 = vector.load %arg17[%c0_147, %c0_148] : memref<1x32xf32, #tpu.memory_space<vmem>>, vector<1x32xf32>
    %cst_149 = arith.constant dense<0.000000e+00> : vector<16xf32>
    %339 = vector.multi_reduction <add>, %336, %cst_149 [1] : vector<16x32xf32> to vector<16xf32>
    %340 = vector.shape_cast %339 : vector<16xf32> to vector<16x1xf32>
    %cst_150 = arith.constant 3.200000e+01 : f32
    %341 = vector.broadcast %cst_150 : f32 to vector<16x1xf32>
    %342 = arith.divf %340, %341 : vector<16x1xf32>
    %343 = vector.broadcast %342 : vector<16x1xf32> to vector<16x32xf32>
    %344 = arith.subf %336, %343 : vector<16x32xf32>
    %345 = vector.broadcast %342 : vector<16x1xf32> to vector<16x32xf32>
    %346 = arith.subf %336, %345 : vector<16x32xf32>
    %347 = arith.mulf %344, %346 : vector<16x32xf32>
    %cst_151 = arith.constant dense<0.000000e+00> : vector<16xf32>
    %348 = vector.multi_reduction <add>, %347, %cst_151 [1] : vector<16x32xf32> to vector<16xf32>
    %349 = vector.shape_cast %348 : vector<16xf32> to vector<16x1xf32>
    %cst_152 = arith.constant 3.200000e+01 : f32
    %350 = vector.broadcast %cst_152 : f32 to vector<16x1xf32>
    %351 = arith.divf %349, %350 : vector<16x1xf32>
    %352 = vector.broadcast %342 : vector<16x1xf32> to vector<16x32xf32>
    %353 = arith.subf %336, %352 : vector<16x32xf32>
    %cst_153 = arith.constant 9.99999974E-6 : f32
    %354 = vector.broadcast %cst_153 : f32 to vector<16x1xf32>
    %355 = arith.addf %351, %354 : vector<16x1xf32>
    %356 = math.rsqrt %355 : vector<16x1xf32>
    %357 = vector.broadcast %356 : vector<16x1xf32> to vector<16x32xf32>
    %358 = arith.mulf %353, %357 : vector<16x32xf32>
    %359 = vector.broadcast %337 : vector<1x32xf32> to vector<16x32xf32>
    %360 = arith.mulf %358, %359 : vector<16x32xf32>
    %361 = vector.broadcast %338 : vector<1x32xf32> to vector<16x32xf32>
    %362 = arith.addf %360, %361 : vector<16x32xf32>
    %c0_154 = arith.constant 0 : index
    %c0_155 = arith.constant 0 : index
    %c0_156 = arith.constant 0 : index
    %363 = vector.load %arg18[%c0_154, %c0_155, %c0_156] : memref<1x16x32xf32, #tpu.memory_space<vmem>>, vector<1x16x32xf32>
    %364 = vector.shape_cast %363 : vector<1x16x32xf32> to vector<16x32xf32>
    %365 = vector.shape_cast %362 : vector<16x32xf32> to vector<1x16x32xf32>
    tpu.vector_store %arg18[%c0_154, %c0_155, %c0_156], %365 {strides = array<i32>} : memref<1x16x32xf32, #tpu.memory_space<vmem>>, vector<1x16x32xf32>,
    return
  }
  func.func @transform_0(%arg0: i32) -> (i32, i32, i32) {
    %c0_i32 = arith.constant 0 : i32
    %c0_i32_0 = arith.constant 0 : i32
    %c0_i32_1 = arith.constant 0 : i32
    return %arg0, %c0_i32, %c0_i32_0 : i32, i32, i32
  }
  func.func @transform_1(%arg0: i32) -> (i32, i32) {
    %c0_i32 = arith.constant 0 : i32
    %c0_i32_0 = arith.constant 0 : i32
    %c0_i32_1 = arith.constant 0 : i32
    return %c0_i32, %c0_i32_0 : i32, i32
  }
  func.func @transform_2(%arg0: i32) -> (i32, i32) {
    %c0_i32 = arith.constant 0 : i32
    %c0_i32_0 = arith.constant 0 : i32
    %c0_i32_1 = arith.constant 0 : i32
    return %c0_i32, %c0_i32_0 : i32, i32
  }
  func.func @transform_3(%arg0: i32) -> (i32, i32) {
    %c0_i32 = arith.constant 0 : i32
    %c0_i32_0 = arith.constant 0 : i32
    %c0_i32_1 = arith.constant 0 : i32
    return %c0_i32, %c0_i32_0 : i32, i32
  }
  func.func @transform_4(%arg0: i32) -> (i32, i32, i32) {
    %c0_i32 = arith.constant 0 : i32
    %c0_i32_0 = arith.constant 0 : i32
    %c0_i32_1 = arith.constant 0 : i32
    %c0_i32_2 = arith.constant 0 : i32
    return %c0_i32, %c0_i32_0, %c0_i32_1 : i32, i32, i32
  }
  func.func @transform_5(%arg0: i32) -> (i32, i32, i32) {
    %c0_i32 = arith.constant 0 : i32
    %c0_i32_0 = arith.constant 0 : i32
    %c0_i32_1 = arith.constant 0 : i32
    %c0_i32_2 = arith.constant 0 : i32
    return %c0_i32, %c0_i32_0, %c0_i32_1 : i32, i32, i32
  }
  func.func @transform_6(%arg0: i32) -> (i32, i32, i32) {
    %c0_i32 = arith.constant 0 : i32
    %c0_i32_0 = arith.constant 0 : i32
    %c0_i32_1 = arith.constant 0 : i32
    %c0_i32_2 = arith.constant 0 : i32
    return %c0_i32, %c0_i32_0, %c0_i32_1 : i32, i32, i32
  }
  func.func @transform_7(%arg0: i32) -> (i32, i32, i32, i32) {
    %c0_i32 = arith.constant 0 : i32
    %c0_i32_0 = arith.constant 0 : i32
    %c0_i32_1 = arith.constant 0 : i32
    %c0_i32_2 = arith.constant 0 : i32
    %c0_i32_3 = arith.constant 0 : i32
    return %c0_i32, %c0_i32_0, %c0_i32_1, %c0_i32_2 : i32, i32, i32, i32
  }
  func.func @transform_8(%arg0: i32) -> (i32, i32, i32) {
    %c0_i32 = arith.constant 0 : i32
    %c0_i32_0 = arith.constant 0 : i32
    %c0_i32_1 = arith.constant 0 : i32
    %c0_i32_2 = arith.constant 0 : i32
    return %c0_i32, %c0_i32_0, %c0_i32_1 : i32, i32, i32
  }
  func.func @transform_9(%arg0: i32) -> (i32, i32, i32) {
    %c0_i32 = arith.constant 0 : i32
    %c0_i32_0 = arith.constant 0 : i32
    %c0_i32_1 = arith.constant 0 : i32
    %c0_i32_2 = arith.constant 0 : i32
    return %c0_i32, %c0_i32_0, %c0_i32_1 : i32, i32, i32
  }
  func.func @transform_10(%arg0: i32) -> (i32, i32, i32) {
    %c0_i32 = arith.constant 0 : i32
    %c0_i32_0 = arith.constant 0 : i32
    %c0_i32_1 = arith.constant 0 : i32
    %c0_i32_2 = arith.constant 0 : i32
    return %c0_i32, %c0_i32_0, %c0_i32_1 : i32, i32, i32
  }
  func.func @transform_11(%arg0: i32) -> (i32, i32, i32) {
    %c0_i32 = arith.constant 0 : i32
    %c0_i32_0 = arith.constant 0 : i32
    %c0_i32_1 = arith.constant 0 : i32
    %c0_i32_2 = arith.constant 0 : i32
    return %c0_i32, %c0_i32_0, %c0_i32_1 : i32, i32, i32
  }
  func.func @transform_12(%arg0: i32) -> (i32, i32, i32) {
    %c0_i32 = arith.constant 0 : i32
    %c0_i32_0 = arith.constant 0 : i32
    %c0_i32_1 = arith.constant 0 : i32
    %c0_i32_2 = arith.constant 0 : i32
    return %c0_i32, %c0_i32_0, %c0_i32_1 : i32, i32, i32
  }
  func.func @transform_13(%arg0: i32) -> (i32, i32, i32) {
    %c0_i32 = arith.constant 0 : i32
    %c0_i32_0 = arith.constant 0 : i32
    %c0_i32_1 = arith.constant 0 : i32
    %c0_i32_2 = arith.constant 0 : i32
    return %c0_i32, %c0_i32_0, %c0_i32_1 : i32, i32, i32
  }
  func.func @transform_14(%arg0: i32) -> (i32, i32, i32) {
    %c0_i32 = arith.constant 0 : i32
    %c0_i32_0 = arith.constant 0 : i32
    %c0_i32_1 = arith.constant 0 : i32
    %c0_i32_2 = arith.constant 0 : i32
    return %c0_i32, %c0_i32_0, %c0_i32_1 : i32, i32, i32
  }
  func.func @transform_15(%arg0: i32) -> (i32, i32) {
    %c0_i32 = arith.constant 0 : i32
    %c0_i32_0 = arith.constant 0 : i32
    %c0_i32_1 = arith.constant 0 : i32
    return %c0_i32, %c0_i32_0 : i32, i32
  }
  func.func @transform_16(%arg0: i32) -> (i32, i32) {
    %c0_i32 = arith.constant 0 : i32
    %c0_i32_0 = arith.constant 0 : i32
    %c0_i32_1 = arith.constant 0 : i32
    return %c0_i32, %c0_i32_0 : i32, i32
  }
  func.func @transform_17(%arg0: i32) -> (i32, i32, i32) {
    %c0_i32 = arith.constant 0 : i32
    %c0_i32_0 = arith.constant 0 : i32
    %c0_i32_1 = arith.constant 0 : i32
    return %arg0, %c0_i32, %c0_i32_0 : i32, i32, i32
  }
}

</mosaic_0001>

<bundles_post_ra>
// kernel: vit_forward.1
= control target key start
LH: loop header
LB: loop body
LE: loop exit
PB: predicated region body
PF: predicated region fallthrough
CT: control target
= control target key end

     0   :  { %s5636_s0 = inlined_call_operand.vmem [shape: f32[2,16,64], index: 0, kind: input, shape index: {}]   ;;  %s5637_s1 = inlined_call_operand.vmem [shape: f32[64,32], index: 1, kind: input, shape index: {}]   ;;  %s5638_s2 = inlined_call_operand.vmem [shape: f32[1,32], index: 2, kind: input, shape index: {}]   ;;  %s5639_s3 = inlined_call_operand.vmem [shape: f32[16,32], index: 3, kind: input, shape index: {}]   ;;  %s5640_s4 = inlined_call_operand.vmem [shape: f32[2,1,32], index: 4, kind: input, shape index: {}]   ;;  %s5641_s5 = inlined_call_operand.vmem [shape: f32[2,1,32], index: 5, kind: input, shape index: {}]   ;;  %s5642_s6 = inlined_call_operand.vmem [shape: f32[2,32,96], index: 6, kind: input, shape index: {}]   ;;  %s5643_s7 = inlined_call_operand.vmem [shape: f32[2,4,8,32], index: 7, kind: input, shape index: {}]   ;;  %s5644_s8 = inlined_call_operand.vmem [shape: f32[2,1,32], index: 8, kind: input, shape index: {}]   ;;  %s5645_s9 = inlined_call_operand.vmem [shape: f32[2,1,32], index: 9, kind: input, shape index: {}]   ;;  %s5646_s10 = inlined_call_operand.vmem [shape: f32[2,1,32], index: 10, kind: input, shape index: {}]   ;;  %s5647_s11 = inlined_call_operand.vmem [shape: f32[2,32,64], index: 11, kind: input, shape index: {}]   ;;  %s5648_s12 = inlined_call_operand.vmem [shape: f32[2,1,64], index: 12, kind: input, shape index: {}]   ;;  %s5649_s13 = inlined_call_operand.vmem [shape: f32[2,64,32], index: 13, kind: input, shape index: {}]   ;;  %s5650_s14 = inlined_call_operand.vmem [shape: f32[2,1,32], index: 14, kind: input, shape index: {}]   ;;  %s5651_s15 = inlined_call_operand.vmem [shape: f32[1,32], index: 15, kind: input, shape index: {}]   ;;  %s5652_s16 = inlined_call_operand.vmem [shape: f32[1,32], index: 16, kind: input, shape index: {}]   ;;  %s5653_s17 = inlined_call_operand.hbm [shape: f32[2,16,32], index: 17, kind: output, shape index: {}]  }
   0x1   :  { %5664 = sst [smem:[#allocation11_spill]] %s5636_s0 }
   0x2   :  { %5665 = sst [smem:[#allocation12_spill]] %s5637_s1 }
   0x3   :  { %5666 = sst [smem:[#allocation13_spill]] %s5638_s2 }
   0x4   :  { %5667 = sst [smem:[#allocation14_spill]] %s5653_s17 }
   0x5   :  { %22 = vsyncpa [#allocation3], 0 }
   0x6   :  { %24 = vsyncpa [#allocation3 + $0x1], 0  ;;  %s5022_s24 = smov 0   ;;  %s5024_s25 = smov 0  }
   0x7   :  { %s5026_s26 = smov 0   ;;  %s5028_s27 = smov 0  }
   0x8 LB: > { %5668 = sst [smem:[#allocation5_spill]] %s4910_s24  ;;  %s5043_s28 = sadd.s32 4294967295, %s4922_s27   ;;  %s4922_s27 = sphi %s5028_s27, %s5686_s27   ;;  %s4918_s26 = sphi %s5026_s26, %s5691_s26   ;;  %s4914_s25 = sphi %s5024_s25, %s5690_s25   ;;  %s4910_s24 = sphi %s5022_s24, %s5689_s24  }
   0x9   : > { %5669 = sst [smem:[#allocation6_spill]] %s4918_s26  ;;  %s3943_s29 = sadd.s32 4294967294, %s4922_s27  }
   0xa   : > { %5670 = sst [smem:[#allocation7_spill]] %s4922_s27  ;;  %s5047_s0 = sadd.s32 1, %s4922_s27  }
   0xb   : > { %5671 = sst [smem:[#allocation8_spill]] %s5047_s0  ;;  %s399_s30 = sadd.s32 1, %s4918_s26 }
   0xc   : > { %s396_s18 = ssub.s32 %s4922_s27, %s5047_s0  ;;  %p409_p0 = scmp.ne.s32.totalorder %s4918_s26, %s4914_s25 }
   0xd   : > { %p397_p1 = scmp.eq.s32.totalorder %s396_s18, 0  ;;  %p410_p2 = scmp.eq.s32.totalorder %s5043_s28, 1 }
   0xe   : > { %p415_p3 = scmp.ne.s32.totalorder %s4914_s25, %s4910_s24  ;;  %p416_p4 = scmp.eq.s32.totalorder %s3943_s29, 1 }
   0xf   : > { %s5058_s19 = scalar_select %p397_p1, %s4918_s26, %s399_s30  }
  0x10   : > { %p5060_p5 = por %p410_p2, %p409_p0  ;;  %p5064_p6 = por %p416_p4, %p415_p3 }
  0x11   : > { %5672 = sst [smem:[#allocation9_spill]] %s5058_s19  ;;  %p3946_p7 = scmp.ge.s32.totalorder %s4922_s27, 1 }
  0x12   : > { %s5674_s20 = scalar_select %p5064_p6, 1, 0 }
  0x13   : > { %p490_p8 = scmp.lt.s32.totalorder %s4922_s27, 3 }
  0x14   : > { %5675 = sst [smem:[#allocation10_spill]] %s5674_s20 }
  0x15   : > { %p491_p9 = pnand %p3946_p7, %p490_p8 }
  0x16   : > { %s5676_s23 = sld [smem:[#allocation12_spill]] (!%p491_p9)  ;;  %p542_p10 = scmp.lt.s32.totalorder (!%p491_p9), %s5043_s28, 1  ;;  %vm564_vm0 = vcmask (!%p491_p9), 523264   ;;  %v646_v17 = vld [vmem:[%s5639_s3] sm:$0xff] (!%p491_p9)  ;;  %v647_v20 = vld [vmem:[%s5639_s3 + $0x8] sm:$0xff] (!%p491_p9)  ;;  %vm652_vm1 = vcmask (!%p491_p9), 261120  }
  0x17   : > { %494 = sbr.rel (%p491_p9) target bundleno = 5693 (0x163d), region = 88  ;;  %s5677_s26 = sld [smem:[#allocation11_spill]] (!%p491_p9)  ;;  %v696_v35 = vld [vmem:[%s5642_s6] sm:$0xff] (!%p491_p9)  ;;  %v697_v36 = vld [vmem:[%s5642_s6 + $0x8] sm:$0xff] (!%p491_p9)  ;;  %v698_v37 = vld [vmem:[%s5642_s6 + $0x10] sm:$0xff] (!%p491_p9)  ;;  %vm799_vm2 = vcmask (!%p491_p9), 64512  }
  0x18   : > { %s5678_s2 = sld [smem:[#allocation13_spill]] (!%p491_p9)  ;;  %v4490_v38 = vpack.c.bf16 (!%p491_p9), %v697_v36, %v696_v35  ;;  %v699_v39 = vld [vmem:[%s5642_s6 + $0x18] sm:$0xff] (!%p491_p9)  ;;  %v3953_v48 = vld [vmem:[%s5640_s4] ss:$0 sm:$0xff] (!%p491_p9)  ;;  %s4924_s30 = smov (!%p491_p9), 120   ;;  %vm5164_vm3 = vmpackc.low (!%p491_p9), %vm799_vm2, %vm799_vm2  ;;  %vm1152_vm4 = vcmask (!%p491_p9), 130048  }
  0x19   : > { %v4494_v40 = vpack.c.bf16 (!%p491_p9), %v699_v39, %v698_v37  ;;  %v3954_v50 = vld [vmem:[%s5641_s5] ss:$0 sm:$0xff] (!%p491_p9)  ;;  %s4925_s18 = smov (!%p491_p9), 112   ;;  %s5662_s20 = smov (!%p491_p9), 64  }
  0x1a   : > { %4491 = vmatprep.subr.bf16.mxu1 (!%p491_p9), %v4490_v38  ;;  %s539_s21 = sand.u32 (!%p491_p9), 1, %s4914_s25   ;;  %s4929_s22 = smov (!%p491_p9), [#allocation2]  }
  0x1b   : > { %4493 = vmatpush3.bf16.msra.mxu1 (!%p491_p9), %v4490_v38  ;;  %s3947_s24 = sshll.u32 (!%p491_p9), %s539_s21, 4  ;;  %s4864_s17 = sshll.u32 (!%p491_p9), %s4929_s22, 4  ;;  %s4865_s17 = int_to_ptr.vmem [resolvable:$false] %s4864_s17 }
  0x1c   : > { %v549_v0 = vld [vmem:[%s5676_s23] sm:$0xff] (!%p491_p9)  ;;  %v550_v1 = vld [vmem:[%s5676_s23 + $0x8] sm:$0xff] (!%p491_p9)  ;;  %v551_v2 = vld [vmem:[%s5676_s23 + $0x10] sm:$0xff] (!%p491_p9)  ;;  %4495 = vmatprep.subr.bf16.mxu1 (!%p491_p9), %v4494_v40  ;;  %s4866_s27 = scalar_lea.vmem (!%p491_p9), %s4865_s17, 512 }
  0x1d   : > { %v4474_v3 = vpack.c.bf16 (!%p491_p9), %v550_v1, %v549_v0  ;;  %v552_v4 = vld [vmem:[%s5676_s23 + $0x18] sm:$0xff] (!%p491_p9)  ;;  %v553_v6 = vld [vmem:[%s5676_s23 + $0x20] sm:$0xff] (!%p491_p9)  ;;  %v554_v7 = vld [vmem:[%s5676_s23 + $0x28] sm:$0xff] (!%p491_p9) }
  0x1e   : > { %v4478_v5 = vpack.c.bf16 %v552_v4, %v551_v2  ;;  %s543_s29 = scalar_select %p542_p10, %s5043_s28, 1  ;;  %v4482_v8 = vpack.c.bf16 %v554_v7, %v553_v6  ;;  %v555_v9 = vld [vmem:[%s5676_s23 + $0x30] sm:$0xff]  ;;  %v556_v10 = vld [vmem:[%s5676_s23 + $0x38] sm:$0xff]  ;;  %v3950_v14 = vld [vmem:[%s5678_s2] ss:$0 sm:$0xff] }
  0x1f   : > { %4475 = vmatprep.subr.bf16.mxu0 %v4474_v3  ;;  %v4486_v12 = vpack.c.bf16 %v556_v10, %v555_v9  ;;  %4497 = vmatpush3.bf16.msra.mxu1 %v4494_v40 }
  0x20   : > { %4477 = vmatpush3.bf16.msra.mxu0 %v4474_v3  ;;  %s4077_s19 = sshll.u32 %s543_s29, 4 }
  0x21   : > { %4479 = vmatprep.subr.bf16.mxu0 %v4478_v5  ;;  %s546_s0 = scalar_lea.vmem %s5677_s26, %s4077_s19  ;;  %s4926_s26 = smov 104  }
  0x22   : > { %v547_v11 = vld [vmem:[%s546_s0] sm:$0xff]  ;;  %v548_v13 = vld [vmem:[%s546_s0 + $0x8] sm:$0xff]  ;;  %s4927_s0 = smov 96  }
  0x23   : > { %4237 = vmatprep.mubr.msk.f32.mxu0 %vm564_vm0, %v547_v11 }
  0x24   : > { %4481 = vmatpush3.bf16.msra.mxu0 %v4478_v5 }
  0x25   : > { %4483 = vmatprep.subr.bf16.mxu0 %v4482_v8 }
  0x28   : > { %4485 = vmatpush3.bf16.msra.mxu0 %v4482_v8 }
  0x29   : > { %4487 = vmatprep.subr.bf16.mxu0 %v4486_v12 }
  0x2c   : > { %4489 = vmatpush3.bf16.msra.mxu0 %v4486_v12 }
  0x2f   : > { %4238 = vmatmul.mubr.msk.f32.vlgmr.msra.gmra.mrb[0].mxu0 %vm564_vm0, %v548_v13 }
 0x102   : > { %v4239_v15 = vpop.f32.mrb[0].mxu0 }
 0x103   : > { %v637_v16 = vpop.f32.mrb[1].mxu0  ;;  %v643_v18 = vadd.f32 %v4239_v15, %v3950_v14 }
 0x104   : > { %v638_v19 = vadd.f32 %v3950_v14, %v637_v16 }
 0x105   : > { %v5112_v22 = vadd.f32 %v647_v20, %v643_v18 }
 0x106   : > { %v5110_v21 = vadd.f32 %v646_v17, %v638_v19 }
 0x107   : > { %v656_v24 = vsel %vm652_vm1, %v5112_v22, 0.0 }
 0x108   : > { %v653_v23 = vsel %vm652_vm1, %v5110_v21, 0.0 }
 0x109   : > { %654 = vadd.xlane.f32.xlu0 %v653_v23 }
 0x10d   : > { %657 = vadd.xlane.f32.xlu0 %v656_v24 }
 0x196   : > { %v655_v25 = vpop.xlane.xlu0 %654 }
 0x197   : > { %v660_v26 = vmul.f32 0.03125, %v655_v25 }
 0x199   : > { %v662_v27 = vsub.f32 %v5110_v21, %v660_v26 }
 0x19a   : > { %v658_v28 = vpop.xlane.xlu0 %657 }
 0x19b   : > { %v661_v29 = vmul.f32 0.03125, %v658_v28  ;;  %v664_v30 = vmul.f32 %v662_v27, %v662_v27 }
 0x19d   : > { %v663_v31 = vsub.f32 %v5112_v22, %v661_v29  ;;  %v666_v32 = vsel %vm652_vm1, %v664_v30, 0.0 }
 0x19e   : > { %667 = vadd.xlane.f32.xlu1 %v666_v32 }
 0x19f   : > { %v665_v33 = vmul.f32 %v663_v31, %v663_v31 }
 0x1a1   : > { %v669_v34 = vsel %vm652_vm1, %v665_v33, 0.0 }
 0x1a2   : > { %670 = vadd.xlane.f32.xlu1 %v669_v34 }
 0x22b   : > { %v668_v41 = vpop.xlane.xlu1 %667 }
 0x22c   : > { %v672_v42 = vmul.f32 0.03125, %v668_v41 }
 0x22e   : > { %v674_v43 = vadd.f32 1e-05, %v672_v42 }
 0x22f   : > { %v671_v44 = vpop.xlane.xlu1 %670 }
 0x230   : > { %4760 = vrsqrt.f32 %v674_v43  ;;  %v673_v45 = vmul.f32 0.03125, %v671_v44 }
 0x232   : > { %v675_v46 = vadd.f32 1e-05, %v673_v45 }
 0x234   : > { %4762 = vrsqrt.f32 %v675_v46 }
 0x23a   : > { %v4761_v47 = vpop.eup %4760 }
 0x23b   : > { %v678_v49 = vmul.f32 %v4761_v47, %v662_v27 }
 0x23d   : > { %v686_v51 = vmul.f32 %v3953_v48, %v678_v49 }
 0x23e   : > { %v4763_v52 = vpop.eup %4762 }
 0x23f   : > { %v679_v53 = vmul.f32 %v4763_v52, %v663_v31  ;;  %v694_v54 = vadd.f32 %v3954_v50, %v686_v51 }
 0x241   : > { %v687_v55 = vmul.f32 %v3953_v48, %v679_v53  ;;  %4248 = vmatprep.mubr.msk.f32.mxu1 %vm652_vm1, %v694_v54 }
 0x243   : > { %v695_v56 = vadd.f32 %v3954_v50, %v687_v55 }
 0x245   : > { %4249 = vmatmul.mubr.msk.f32.vlgmr.msra.gmra.mrb[0].mxu1 %vm652_vm1, %v695_v56 }
 0x318   : > { %v4250_v57 = vpop.f32.mrb[0].mxu1 }
 0x319   : > { %785 = vrot.lane.b32.xlu1 %v4250_v57, %s4924_s30  ;;  %v772_v58 = vpop.f32.mrb[1].mxu1 }
 0x31a   : > { %783 = vrot.lane.b32.xlu0 %v772_v58, %s4924_s30  ;;  %4255 = vmatprep.mubr.msk.f32.mxu1 %vm799_vm2, %v772_v58  ;;  %v5145_v59 = vpack.i.bf16 %v4250_v57, %v772_v58 }
 0x31d   : > { %789 = vrot.lane.b32.xlu1 %v4250_v57, %s4925_s18 }
 0x31e   : > { %791 = vrot.lane.b32.xlu0 %v772_v58, %s4926_s26 }
 0x321   : > { %787 = vrot.lane.b32.xlu1 %v772_v58, %s4925_s18 }
 0x322   : > { %4681 = vrot.lane.b32.xlu0 %v5145_v59, %s4927_s0 }
 0x325   : > { %793 = vrot.lane.b32.xlu1 %v4250_v57, %s4926_s26 }
 0x38b   : > { %v786_v60 = vpop.permute.xlu1 %785 }
 0x38c   : > { %v784_v61 = vpop.permute.xlu0 %783 }
 0x38d   : > { %v5153_v62 = vpack.i.bf16 %v786_v60, %v784_v61  ;;  %4262 = vmatprep.mubr.msk.f32.mxu0 %vm799_vm2, %v784_v61 }
 0x38f   : > { %v790_v63 = vpop.permute.xlu1 %789  ;;  %4686 = vrot.lane.b32.xlu1 %v5153_v62, %s4927_s0 }
 0x390   : > { %v792_v0 = vpop.permute.xlu0 %791 }
 0x393   : > { %v788_v1 = vpop.permute.xlu1 %787 }
 0x394   : > { %v5158_v2 = vpack.i.bf16 %v790_v63, %v788_v1  ;;  %v4682_v3 = vpop.permute.xlu0 %4681 }
 0x395   : > { %v4684_v4 = vunpack.i.h.bf16 %v4682_v3  ;;  %v4683_v5 = vunpack.i.l.bf16 %v4682_v3 }
 0x396   : > { %4691 = vrot.lane.b32.xlu0 %v5158_v2, %s4927_s0 }
 0x397   : > { %v4498_v7 = vpack.c.bf16 %v4684_v4, %v4683_v5  ;;  %v794_v8 = vpop.permute.xlu1 %793 }
 0x398   : > { %v5168_v9 = vpack.i.bf16 %v794_v8, %v792_v0 }
 0x399   : > { %4500 = vmatprep.subr.msk.bf16.mxu1 %vm5164_vm3, %v4498_v7 }
 0x39a   : > { %4696 = vrot.lane.b32.xlu1 %v5168_v9, %s4927_s0  ;;  %4503 = vmatpush3.bf16.xpose.msk.msra.mxu1 %vm5164_vm3, %v4498_v7 }
 0x3a1   : > { %4256 = vmatmul.mubr.msk.f32.vlgmr.msra.gmra.mrb[2].mxu1 %vm799_vm2, %v4250_v57 }
 0x3a2   : > { %4269 = vmatprep.mubr.msk.f32.mxu1 %vm799_vm2, %v788_v1 }
 0x401   : > { %v4687_v10 = vpop.permute.xlu1 %4686 }
 0x402   : > { %v4689_v11 = vunpack.i.h.bf16 %v4687_v10  ;;  %v4688_v12 = vunpack.i.l.bf16 %v4687_v10 }
 0x404   : > { %v4504_v13 = vpack.c.bf16 %v4689_v11, %v4688_v12 }
 0x406   : > { %4506 = vmatprep.subr.msk.bf16.mxu0 %vm5164_vm3, %v4504_v13 }
 0x407   : > { %4509 = vmatpush3.bf16.xpose.msk.msra.mxu0 %vm5164_vm3, %v4504_v13 }
 0x408   : > { %v4692_v14 = vpop.permute.xlu0 %4691 }
 0x409   : > { %v4694_v15 = vunpack.i.h.bf16 %v4692_v14  ;;  %v4693_v16 = vunpack.i.l.bf16 %v4692_v14 }
 0x40b   : > { %v4510_v17 = vpack.c.bf16 %v4694_v15, %v4693_v16 }
 0x40c   : > { %v4697_v18 = vpop.permute.xlu1 %4696 }
 0x40d   : > { %v4699_v19 = vunpack.i.h.bf16 %v4697_v18  ;;  %v4698_v20 = vunpack.i.l.bf16 %v4697_v18  ;;  %4512 = vmatprep.subr.msk.bf16.mxu1 %vm5164_vm3, %v4510_v17 }
 0x40e   : > { %4263 = vmatmul.mubr.msk.f32.vlgmr.msra.gmra.mrb[2].mxu0 %vm799_vm2, %v786_v60  ;;  %4515 = vmatpush3.bf16.xpose.msk.msra.mxu1 %vm5164_vm3, %v4510_v17 }
 0x40f   : > { %v4516_v23 = vpack.c.bf16 %v4699_v19, %v4698_v20  ;;  %4276 = vmatprep.mubr.msk.f32.mxu0 %vm799_vm2, %v792_v0 }
 0x411   : > { %4518 = vmatprep.subr.msk.bf16.mxu0 %vm5164_vm3, %v4516_v23 }
 0x412   : > { %4521 = vmatpush3.bf16.xpose.msk.msra.mxu0 %vm5164_vm3, %v4516_v23 }
 0x415   : > { %4270 = vmatmul.mubr.msk.f32.vlgmr.msra.gmra.mrb[4].mxu1 %vm799_vm2, %v790_v63 }
 0x419   : > { %4277 = vmatmul.mubr.msk.f32.vlgmr.msra.gmra.mrb[4].mxu0 %vm799_vm2, %v794_v8 }
 0x474   : > { %v4257_v24 = vpop.f32.mrb[2].mxu1 }
 0x475   : > { %v1145_v25 = vmul.f32 0.35355338, %v4257_v24  ;;  %v874_v26 = vpop.f32.mrb[3].mxu1 }
 0x476   : > { %v1144_v27 = vmul.f32 0.35355338, %v874_v26 }
 0x477   : > { %v1156_v28 = vsel %vm1152_vm4, %v1145_v25, -inf }
 0x478   : > { %1157 = vmax.xlane.f32.xlu1 %v1156_v28  ;;  %v1153_v29 = vsel %vm1152_vm4, %v1144_v27, -inf }
 0x479   : > { %1154 = vmax.xlane.f32.xlu0 %v1153_v29 }
 0x4e1   : > { %v4264_v30 = vpop.f32.mrb[2].mxu0 }
 0x4e2   : > { %v1147_v31 = vmul.f32 0.35355338, %v4264_v30  ;;  %v961_v32 = vpop.f32.mrb[3].mxu0 }
 0x4e3   : > { %v1146_v33 = vmul.f32 0.35355338, %v961_v32 }
 0x4e4   : > { %v1162_v34 = vsel %vm1152_vm4, %v1147_v31, -inf }
 0x4e5   : > { %1163 = vmax.xlane.f32.xlu0 %v1162_v34  ;;  %v1159_v36 = vsel %vm1152_vm4, %v1146_v33, -inf }
 0x4e8   : > { %v4271_v35 = vpop.f32.mrb[4].mxu1 }
 0x4e9   : > { %v1149_v37 = vmul.f32 0.35355338, %v4271_v35  ;;  %1160 = vmax.xlane.f32.xlu0 %v1159_v36  ;;  %v1048_v38 = vpop.f32.mrb[5].mxu1 }
 0x4ea   : > { %v1148_v39 = vmul.f32 0.35355338, %v1048_v38 }
 0x4eb   : > { %v1168_v40 = vsel %vm1152_vm4, %v1149_v37, -inf }
 0x4ec   : > { %v4278_v41 = vpop.f32.mrb[4].mxu0  ;;  %1169 = vmax.xlane.f32.xlu1 %v1168_v40  ;;  %v1165_v42 = vsel %vm1152_vm4, %v1148_v39, -inf }
 0x4ed   : > { %v1151_v43 = vmul.f32 0.35355338, %v4278_v41  ;;  %v1135_v44 = vpop.f32.mrb[5].mxu0  ;;  %1166 = vmax.xlane.f32.xlu0 %v1165_v42 }
 0x4ee   : > { %v1150_v45 = vmul.f32 0.35355338, %v1135_v44 }
 0x4ef   : > { %v1174_v46 = vsel %vm1152_vm4, %v1151_v43, -inf }
 0x4f0   : > { %1175 = vmax.xlane.f32.xlu1 %v1174_v46  ;;  %v1171_v47 = vsel %vm1152_vm4, %v1150_v45, -inf }
 0x4f1   : > { %1172 = vmax.xlane.f32.xlu0 %v1171_v47 }
 0x505   : > { %v1158_v48 = vpop.xlane.xlu1 %1157 }
 0x506   : > { %v1178_v49 = vsub.f32 %v1145_v25, %v1158_v48  ;;  %v1155_v50 = vpop.xlane.xlu0 %1154 }
 0x507   : > { %v1177_v51 = vsub.f32 %v1144_v27, %v1155_v50 }
 0x508   : > { %v1187_v52 = vmul.f32 1.442695, %v1178_v49 }
 0x509   : > { %v1185_v53 = vmul.f32 1.442695, %v1177_v51 }
 0x50a   : > { %4764 = vpow2.f32 %v1187_v52 }
 0x50b   : > { %4766 = vpow2.f32 %v1185_v53 }
 0x514   : > { %v5202_v54 = vpop.eup %4764 }
 0x515   : > { %v4767_v55 = vpop.eup %4766  ;;  %v1204_v56 = vsel %vm1152_vm4, %v5202_v54, 0.0 }
 0x516   : > { %1205 = vadd.xlane.f32.xlu1 %v1204_v56  ;;  %v1201_v57 = vsel %vm1152_vm4, %v4767_v55, 0.0 }
 0x517   : > { %1202 = vadd.xlane.f32.xlu0 %v1201_v57 }
 0x572   : > { %v1164_v58 = vpop.xlane.xlu0 %1163 }
 0x573   : > { %v1180_v60 = vsub.f32 %v1147_v31, %v1164_v58 }
 0x575   : > { %v1191_v61 = vmul.f32 1.442695, %v1180_v60 }
 0x576   : > { %v1161_v63 = vpop.xlane.xlu0 %1160 }
 0x577   : > { %4768 = vpow2.f32 %v1191_v61  ;;  %v1179_v0 = vsub.f32 %v1146_v33, %v1161_v63 }
 0x579   : > { %v1189_v1 = vmul.f32 1.442695, %v1179_v0  ;;  %v1170_v3 = vpop.xlane.xlu1 %1169 }
 0x57a   : > { %v1182_v4 = vsub.f32 %v1149_v37, %v1170_v3  ;;  %v1167_v5 = vpop.xlane.xlu0 %1166 }
 0x57b   : > { %4770 = vpow2.f32 %v1189_v1  ;;  %v1181_v7 = vsub.f32 %v1148_v39, %v1167_v5 }
 0x57c   : > { %v1195_v8 = vmul.f32 1.442695, %v1182_v4 }
 0x57d   : > { %v1193_v10 = vmul.f32 1.442695, %v1181_v7  ;;  %v1176_v11 = vpop.xlane.xlu1 %1175  ;;  %v1589_v7 = vld [vmem:[%s5643_s7] sm:$0xff] }
 0x57e   : > { %4772 = vpow2.f32 %v1195_v8  ;;  %v1184_v12 = vsub.f32 %v1151_v43, %v1176_v11  ;;  %v1173_v13 = vpop.xlane.xlu0 %1172  ;;  %v1590_v8 = vld [vmem:[%s5643_s7 + $0x8] sm:$0xff]  ;;  %v1592_v11 = vld [vmem:[%s5643_s7 + $0x18] sm:$0xff] }
 0x57f   : > { %4774 = vpow2.f32 %v1193_v10  ;;  %v1183_v14 = vsub.f32 %v1150_v45, %v1173_v13  ;;  %v1591_v10 = vld [vmem:[%s5643_s7 + $0x10] sm:$0xff] }
 0x580   : > { %v1199_v15 = vmul.f32 1.442695, %v1184_v12 }
 0x581   : > { %v5207_v16 = vpop.eup %4768  ;;  %v1197_v17 = vmul.f32 1.442695, %v1183_v14 }
 0x582   : > { %4776 = vpow2.f32 %v1199_v15  ;;  %v1210_v18 = vsel %vm1152_vm4, %v5207_v16, 0.0 }
 0x583   : > { %4778 = vpow2.f32 %v1197_v17  ;;  %1211 = vadd.xlane.f32.xlu1 %v1210_v18 }
 0x585   : > { %v4771_v19 = vpop.eup %4770 }
 0x586   : > { %v1207_v20 = vsel %vm1152_vm4, %v4771_v19, 0.0 }
 0x587   : > { %1208 = vadd.xlane.f32.xlu0 %v1207_v20 }
 0x588   : > { %v5212_v23 = vpop.eup %4772 }
 0x589   : > { %v5214_v24 = vpop.eup %4774  ;;  %v1216_v25 = vsel %vm1152_vm4, %v5212_v23, 0.0 }
 0x58a   : > { %1217 = vadd.xlane.f32.xlu1 %v1216_v25  ;;  %v1213_v26 = vsel %vm1152_vm4, %v5214_v24, 0.0 }
 0x58b   : > { %1214 = vadd.xlane.f32.xlu0 %v1213_v26 }
 0x58c   : > { %v5220_v27 = vpop.eup %4776 }
 0x58d   : > { %v4779_v28 = vpop.eup %4778  ;;  %v1222_v29 = vsel %vm1152_vm4, %v5220_v27, 0.0 }
 0x58e   : > { %1223 = vadd.xlane.f32.xlu1 %v1222_v29  ;;  %v1219_v30 = vsel %vm1152_vm4, %v4779_v28, 0.0 }
 0x58f   : > { %1220 = vadd.xlane.f32.xlu0 %v1219_v30 }
 0x59f   : > { %4706 = vrot.lane.b32.xlu1 %v5153_v62, %s5662_s20 }
 0x5a3   : > { %4711 = vrot.lane.b32.xlu1 %v5158_v2, %s5662_s20  ;;  %v1206_v34 = vpop.xlane.xlu1 %1205 }
 0x5a4   : > { %v1203_v31 = vpop.xlane.xlu0 %1202 }
 0x5a5   : > { %4780 = vrcp.f32 %v1203_v31  ;;  %4701 = vrot.lane.b32.xlu0 %v5145_v59, %s5662_s20 }
 0x5a7   : > { %4716 = vrot.lane.b32.xlu1 %v5168_v9, %s5662_s20  ;;  %s5682_s20 = sld [smem:[#allocation14_spill]] }
 0x5af   : > { %v4781_v32 = vpop.eup %4780 }
 0x5b0   : > { %v1233_v33 = vmul.f32 %v4781_v32, %v4767_v55 }
 0x5b2   : > { %4283 = vmatprep.mubr.msk.f32.mxu0 %vm1152_vm4, %v1233_v33 }
 0x610   : > { %v1212_v35 = vpop.xlane.xlu1 %1211 }
 0x614   : > { %v1209_v36 = vpop.xlane.xlu0 %1208 }
 0x615   : > { %4782 = vrcp.f32 %v1209_v36 }
 0x616   : > { %4784 = vrcp.f32 %v1212_v35 }
 0x617   : > { %v1218_v62 = vpop.xlane.xlu1 %1217  ;;  %4786 = vrcp.f32 %v1206_v34 }
 0x618   : > { %v1215_v37 = vpop.xlane.xlu0 %1214 }
 0x619   : > { %4788 = vrcp.f32 %v1215_v37 }
 0x61b   : > { %v1224_v2 = vpop.xlane.xlu1 %1223 }
 0x61c   : > { %v1221_v38 = vpop.xlane.xlu0 %1220 }
 0x61d   : > { %4790 = vrcp.f32 %v1221_v38  ;;  %v3989_v38 = vld [vmem:[%s5644_s8] ss:$0 sm:$0xff] }
 0x61e   : > { %4792 = vrcp.f32 %v1218_v62 }
 0x61f   : > { %v4783_v59 = vpop.eup %4782  ;;  %v4707_v39 = vpop.permute.xlu1 %4706  ;;  %4794 = vrcp.f32 %v1224_v2 }
 0x620   : > { %v4709_v9 = vunpack.i.h.bf16 %v4707_v39  ;;  %v4708_v40 = vunpack.i.l.bf16 %v4707_v39  ;;  %v4702_v41 = vpop.permute.xlu0 %4701  ;;  %v1235_v42 = vmul.f32 %v4783_v59, %v4771_v19  ;;  %v4785_v46 = vpop.eup %4784 }
 0x621   : > { %v4704_v43 = vunpack.i.h.bf16 %v4702_v41  ;;  %v4703_v44 = vunpack.i.l.bf16 %v4702_v41  ;;  %v4787_v49 = vpop.eup %4786  ;;  %v1236_v53 = vmul.f32 %v4785_v46, %v5207_v16 }
 0x622   : > { %v4526_v45 = vpack.c.bf16 %v4709_v9, %v4708_v40  ;;  %4290 = vmatprep.mubr.msk.f32.mxu1 %vm1152_vm4, %v1235_v42  ;;  %v1234_v57 = vmul.f32 %v4787_v49, %v5202_v54 }
 0x623   : > { %v4522_v47 = vpack.c.bf16 %v4704_v43, %v4703_v44  ;;  %v4712_v48 = vpop.permute.xlu1 %4711  ;;  %v4789_v52 = vpop.eup %4788 }
 0x624   : > { %v4714_v50 = vunpack.i.h.bf16 %v4712_v48  ;;  %v4713_v51 = vunpack.i.l.bf16 %v4712_v48  ;;  %4527 = vmatprep.subr.bf16.mxu1 %v4526_v45  ;;  %v1237_v0 = vmul.f32 %v4789_v52, %v5214_v24 }
 0x625   : > { %4523 = vmatprep.subr.bf16.mxu0 %v4522_v47  ;;  %4529 = vmatpush3.bf16.msra.mxu1 %v4526_v45 }
 0x626   : > { %v4530_v55 = vpack.c.bf16 %v4714_v50, %v4713_v51  ;;  %4525 = vmatpush3.bf16.msra.mxu0 %v4522_v47 }
 0x627   : > { %v4791_v56 = vpop.eup %4790  ;;  %v4717_v58 = vpop.permute.xlu1 %4716 }
 0x628   : > { %v4793_v60 = vpop.eup %4792  ;;  %v4719_v61 = vunpack.i.h.bf16 %v4717_v58  ;;  %v4718_v63 = vunpack.i.l.bf16 %v4717_v58  ;;  %4291 = vmatmul.mubr.msk.f32.vlgmr.msra.gmra.mrb[6].mxu1 %vm1152_vm4, %v1236_v53  ;;  %4531 = vmatprep.subr.bf16.mxu0 %v4530_v55  ;;  %v1239_v1 = vmul.f32 %v4791_v56, %v4779_v28  ;;  %v1986_v56 = vld [vmem:[%s5647_s11] sm:$0xff] }
 0x629   : > { %4284 = vmatmul.mubr.msk.f32.vlgmr.msra.gmra.mrb[6].mxu0 %vm1152_vm4, %v1234_v57  ;;  %v4795_v4 = vpop.eup %4794  ;;  %v1238_v5 = vmul.f32 %v4793_v60, %v5212_v23  ;;  %v1987_v57 = vld [vmem:[%s5647_s11 + $0x8] sm:$0xff]  ;;  %v1988_v60 = vld [vmem:[%s5647_s11 + $0x10] sm:$0xff] }
 0x62a   : > { %v4534_v3 = vpack.c.bf16 %v4719_v61, %v4718_v63  ;;  %4533 = vmatpush3.bf16.msra.mxu0 %v4530_v55  ;;  %4297 = vmatprep.mubr.msk.f32.mxu0 %vm1152_vm4, %v1237_v0  ;;  %v1240_v54 = vmul.f32 %v4795_v4, %v5220_v27  ;;  %v4538_v58 = vpack.c.bf16 %v1987_v57, %v1986_v56  ;;  %v1989_v61 = vld [vmem:[%s5647_s11 + $0x18] sm:$0xff] }
 0x62b   : > { %4304 = vmatprep.mubr.msk.f32.mxu1 %vm1152_vm4, %v1239_v1  ;;  %4307 = vmatprep.subr.mxu0 %v1589_v7  ;;  %v4542_v63 = vpack.c.bf16 %v1989_v61, %v1988_v60 }
 0x62c   : > { %4535 = vmatprep.subr.bf16.mxu1 %v4534_v3 }
 0x62d   : > { %4298 = vmatmul.mubr.msk.f32.vlgmr.msra.gmra.mrb[8].mxu0 %vm1152_vm4, %v1238_v5  ;;  %4537 = vmatpush3.bf16.msra.mxu1 %v4534_v3 }
 0x62e   : > { %4312 = vmatprep.subr.mxu1 %v1590_v8  ;;  %4308 = vmatpush3.msra.mxu0 %v1589_v7 }
 0x62f   : > { %4317 = vmatprep.subr.mxu0 %v1591_v10 }
 0x630   : > { %4305 = vmatmul.mubr.msk.f32.vlgmr.msra.gmra.mrb[8].mxu1 %vm1152_vm4, %v1240_v54 }
 0x631   : > { %4313 = vmatpush3.msra.mxu1 %v1590_v8  ;;  %v3990_v8 = vld [vmem:[%s5645_s9] ss:$0 sm:$0xff] }
 0x632   : > { %4322 = vmatprep.subr.mxu1 %v1592_v11 }
 0x6fb   : > { %v4292_v12 = vpop.f32.mrb[6].mxu1 }
 0x6fc   : > { %v4285_v13 = vpop.f32.mrb[6].mxu0  ;;  %v1406_v14 = vpop.f32.mrb[7].mxu1 }
 0x6fd   : > { %v1319_v15 = vpop.f32.mrb[7].mxu0  ;;  %4314 = vmatprep.mubr.msk.f32.mxu1 %vm799_vm2, %v1406_v14 }
 0x6fe   : > { %4309 = vmatprep.mubr.msk.f32.mxu0 %vm799_vm2, %v1319_v15  ;;  %4315 = vmatmul.mubr.msk.f32.vlgmr.msra.gmra.mrb[10].mxu1 %vm799_vm2, %v4292_v12 }
 0x6ff   : > { %4310 = vmatmul.mubr.msk.f32.vlgmr.msra.gmra.mrb[10].mxu0 %vm799_vm2, %v4285_v13  ;;  %4323 = vmatpush3.msra.mxu1 %v1592_v11  ;;  %v3991_v11 = vld [vmem:[%s5646_s10] ss:$0 sm:$0xff] }
 0x700   : > { %v4299_v16 = vpop.f32.mrb[8].mxu0  ;;  %4318 = vmatpush3.msra.mxu0 %v1591_v10 }
 0x701   : > { %v1493_v17 = vpop.f32.mrb[9].mxu0  ;;  %4539 = vmatprep.subr.bf16.mxu0 %v4538_v58 }
 0x702   : > { %4319 = vmatprep.mubr.msk.f32.mxu0 %vm799_vm2, %v1493_v17 }
 0x703   : > { %v4306_v18 = vpop.f32.mrb[8].mxu1  ;;  %4320 = vmatmul.mubr.msk.f32.vlgmr.msra.gmra.mrb[12].mxu0 %vm799_vm2, %v4299_v16 }
 0x704   : > { %v1580_v19 = vpop.f32.mrb[9].mxu1  ;;  %4541 = vmatpush3.bf16.msra.mxu0 %v4538_v58 }
 0x705   : > { %4324 = vmatprep.mubr.msk.f32.mxu1 %vm799_vm2, %v1580_v19  ;;  %4543 = vmatprep.subr.bf16.mxu0 %v4542_v63  ;;  %v2133_v19 = vld [vmem:[%s5649_s13 + $0x8] sm:$0xff] }
 0x706   : > { %4325 = vmatmul.mubr.msk.f32.vlgmr.msra.gmra.mrb[12].mxu1 %vm799_vm2, %v4306_v18  ;;  %v2132_v18 = vld [vmem:[%s5649_s13] sm:$0xff] }
 0x708   : > { %4545 = vmatpush3.bf16.msra.mxu0 %v4542_v63 }
 0x7d1   : > { %v4316_v20 = vpop.f32.mrb[10].mxu1 }
 0x7d2   : > { %v1925_v23 = vsel %vm652_vm1, %v4316_v20, 0.0  ;;  %v4311_v24 = vpop.f32.mrb[10].mxu0  ;;  %v1746_v25 = vpop.f32.mrb[11].mxu1  ;;  %v4546_v20 = vpack.c.bf16 %v2133_v19, %v2132_v18 }
 0x7d3   : > { %v1924_v26 = vsel %vm652_vm1, %v4311_v24, 0.0  ;;  %v1918_v27 = vsel %vm652_vm1, %v1746_v25, 0.0  ;;  %v1665_v28 = vpop.f32.mrb[11].mxu0  ;;  %v2135_v24 = vld [vmem:[%s5649_s13 + $0x18] sm:$0xff] }
 0x7d4   : > { %v1926_v29 = vadd.f32 %v1925_v23, %v1924_v26  ;;  %v1917_v30 = vsel %vm652_vm1, %v1665_v28, 0.0  ;;  %4547 = vmatprep.subr.bf16.mxu1 %v4546_v20  ;;  %v2134_v23 = vld [vmem:[%s5649_s13 + $0x10] sm:$0xff]  ;;  %v2136_v26 = vld [vmem:[%s5649_s13 + $0x20] sm:$0xff] }
 0x7d5   : > { %v1919_v31 = vadd.f32 %v1918_v27, %v1917_v30  ;;  %4549 = vmatpush3.bf16.msra.mxu1 %v4546_v20  ;;  %v4550_v25 = vpack.c.bf16 %v2135_v24, %v2134_v23  ;;  %v2137_v27 = vld [vmem:[%s5649_s13 + $0x28] sm:$0xff]  ;;  %v2139_v30 = vld [vmem:[%s5649_s13 + $0x38] sm:$0xff] }
 0x7d6   : > { %v4321_v32 = vpop.f32.mrb[12].mxu0  ;;  %v4554_v28 = vpack.c.bf16 %v2137_v27, %v2136_v26  ;;  %v3997_v27 = vld [vmem:[%s5650_s14] ss:$0 sm:$0xff] }
 0x7d7   : > { %v1927_v33 = vsel %vm652_vm1, %v4321_v32, 0.0  ;;  %v1827_v34 = vpop.f32.mrb[13].mxu0  ;;  %4551 = vmatprep.subr.bf16.mxu1 %v4550_v25  ;;  %v3992_v32 = vld [vmem:[%s5648_s12] ss:$0 sm:$0xff] }
 0x7d8   : > { %v1928_v35 = vadd.f32 %v1927_v33, %v1926_v29  ;;  %v1920_v36 = vsel %vm652_vm1, %v1827_v34, 0.0  ;;  %v2138_v29 = vld [vmem:[%s5649_s13 + $0x30] sm:$0xff] }
 0x7d9   : > { %v1921_v62 = vadd.f32 %v1920_v36, %v1919_v31  ;;  %v4326_v37 = vpop.f32.mrb[12].mxu1  ;;  %4553 = vmatpush3.bf16.msra.mxu1 %v4550_v25  ;;  %v4558_v31 = vpack.c.bf16 %v2139_v30, %v2138_v29 }
 0x7da   : > { %v1929_v2 = vsel %vm652_vm1, %v4326_v37, 0.0  ;;  %v1908_v59 = vpop.f32.mrb[13].mxu1  ;;  %4555 = vmatprep.subr.bf16.mxu1 %v4554_v28 }
 0x7db   : > { %v1930_v39 = vadd.f32 %v1929_v2, %v1928_v35  ;;  %v1922_v9 = vsel %vm652_vm1, %v1908_v59, 0.0 }
 0x7dc   : > { %v1923_v40 = vadd.f32 %v1922_v9, %v1921_v62 }
 0x7dd   : > { %v1939_v41 = vadd.f32 %v3989_v38, %v1930_v39  ;;  %4557 = vmatpush3.bf16.msra.mxu1 %v4554_v28 }
 0x7de   : > { %v1938_v42 = vadd.f32 %v3989_v38, %v1923_v40  ;;  %4559 = vmatprep.subr.bf16.mxu1 %v4558_v31 }
 0x7df   : > { %v5278_v43 = vadd.f32 %v1939_v41, %v5112_v22 }
 0x7e0   : > { %v5281_v44 = vadd.f32 %v1938_v42, %v5110_v21 }
 0x7e1   : > { %v1947_v45 = vsel %vm652_vm1, %v5278_v43, 0.0  ;;  %4561 = vmatpush3.bf16.msra.mxu1 %v4558_v31 }
 0x7e2   : > { %1948 = vadd.xlane.f32.xlu1 %v1947_v45  ;;  %v1944_v46 = vsel %vm652_vm1, %v5281_v44, 0.0 }
 0x7e3   : > { %1945 = vadd.xlane.f32.xlu0 %v1944_v46 }
 0x86f   : > { %v1949_v47 = vpop.xlane.xlu1 %1948 }
 0x870   : > { %v1951_v48 = vmul.f32 0.03125, %v1949_v47  ;;  %v1946_v49 = vpop.xlane.xlu0 %1945 }
 0x871   : > { %v1950_v50 = vmul.f32 0.03125, %v1946_v49 }
 0x872   : > { %v1953_v51 = vsub.f32 %v5278_v43, %v1951_v48 }
 0x873   : > { %v1952_v22 = vsub.f32 %v5281_v44, %v1950_v50 }
 0x874   : > { %v1955_v53 = vmul.f32 %v1953_v51, %v1953_v51 }
 0x875   : > { %v1954_v52 = vmul.f32 %v1952_v22, %v1952_v22 }
 0x876   : > { %v1959_v55 = vsel %vm652_vm1, %v1955_v53, 0.0 }
 0x877   : > { %v1956_v21 = vsel %vm652_vm1, %v1954_v52, 0.0 }
 0x878   : > { %1957 = vadd.xlane.f32.xlu0 %v1956_v21 }
 0x87c   : > { %1960 = vadd.xlane.f32.xlu0 %v1959_v55 }
 0x905   : > { %v1958_v0 = vpop.xlane.xlu0 %1957 }
 0x906   : > { %v1962_v1 = vmul.f32 0.03125, %v1958_v0 }
 0x908   : > { %v1964_v3 = vadd.f32 1e-05, %v1962_v1 }
 0x909   : > { %v1961_v4 = vpop.xlane.xlu0 %1960 }
 0x90a   : > { %4796 = vrsqrt.f32 %v1964_v3  ;;  %v1963_v5 = vmul.f32 0.03125, %v1961_v4 }
 0x90c   : > { %v1965_v54 = vadd.f32 1e-05, %v1963_v5 }
 0x90e   : > { %4798 = vrsqrt.f32 %v1965_v54 }
 0x914   : > { %v4797_v7 = vpop.eup %4796 }
 0x915   : > { %v1968_v10 = vmul.f32 %v4797_v7, %v1952_v22 }
 0x917   : > { %v1976_v12 = vmul.f32 %v3990_v8, %v1968_v10 }
 0x918   : > { %v4799_v13 = vpop.eup %4798 }
 0x919   : > { %v1969_v14 = vmul.f32 %v4799_v13, %v1953_v51  ;;  %v1984_v15 = vadd.f32 %v3991_v11, %v1976_v12 }
 0x91b   : > { %v1977_v16 = vmul.f32 %v3990_v8, %v1969_v14  ;;  %4335 = vmatprep.mubr.msk.f32.mxu0 %vm652_vm1, %v1984_v15 }
 0x91d   : > { %v1985_v17 = vadd.f32 %v3991_v11, %v1977_v16 }
 0x91f   : > { %4336 = vmatmul.mubr.msk.f32.vlgmr.msra.gmra.mrb[14].mxu0 %vm652_vm1, %v1985_v17 }
 0x9f2   : > { %v4337_v33 = vpop.f32.mrb[14].mxu0 }
 0x9f3   : > { %v2075_v34 = vadd.f32 %v4337_v33, %v3992_v32  ;;  %v2069_v35 = vpop.f32.mrb[15].mxu0 }
 0x9f4   : > { %v2070_v36 = vadd.f32 %v3992_v32, %v2069_v35 }
 0x9f5   : > { %v2081_v62 = vmul.f32 0.70710677, %v2075_v34  ;;  %v2079_v23 = vmul.f32 0.5, %v2075_v34 }
 0x9f6   : > { %v2080_v37 = vmul.f32 0.70710677, %v2070_v36  ;;  %v2078_v19 = vmul.f32 0.5, %v2070_v36 }
 0x9f7   : > { %v2083_v2 = vand.u32 2147483647, %v2081_v62  ;;  %vm2123_vm5 = vcmp.ge.f32.partialorder %v2081_v62, 0.0 }
 0x9f8   : > { %v2082_v38 = vand.u32 2147483647, %v2080_v37  ;;  %vm2122_vm6 = vcmp.ge.f32.partialorder %v2080_v37, 0.0 }
 0x9f9   : > { %v2085_v59 = vmul.f32 0.3275911, %v2083_v2  ;;  %v2111_v41 = vsub.f32 0.0, %v2083_v2 }
 0x9fa   : > { %v2084_v39 = vmul.f32 0.3275911, %v2082_v38  ;;  %v2110_v42 = vsub.f32 0.0, %v2082_v38 }
 0x9fb   : > { %v2087_v9 = vadd.f32 1.0, %v2085_v59  ;;  %v2113_v46 = vmul.f32 %v2111_v41, %v2083_v2 }
 0x9fc   : > { %v2086_v40 = vadd.f32 1.0, %v2084_v39  ;;  %v2112_v49 = vmul.f32 %v2110_v42, %v2082_v38  ;;  %v4004_v42 = vld [vmem:[%s5642_s6 + $0x30] sm:$0xff] }
 0x9fd   : > { %4800 = vrcp.f32 %v2087_v9  ;;  %v2116_v22 = vmul.f32 1.442695, %v2113_v46  ;;  %v4002_v9 = vld [vmem:[%s5642_s6 + $0x20] sm:$0xff] }
 0x9fe   : > { %4802 = vrcp.f32 %v2086_v40  ;;  %v2114_v53 = vmul.f32 1.442695, %v2112_v49  ;;  %v4003_v40 = vld [vmem:[%s5642_s6 + $0x28] sm:$0xff] }
 0x9ff   : > { %4804 = vpow2.f32 %v2116_v22  ;;  %v4562_v41 = vpack.c.bf16 %v4003_v40, %v4002_v9 }
 0xa00   : > { %4806 = vpow2.f32 %v2114_v53 }
 0xa01   : > { %4563 = vmatprep.subr.bf16.mxu0 %v4562_v41 }
 0xa02   : > { %4565 = vmatpush3.bf16.msra.mxu0 %v4562_v41 }
 0xa07   : > { %v4801_v45 = vpop.eup %4800 }
 0xa08   : > { %v4803_v47 = vpop.eup %4802  ;;  %v2093_v48 = vmul.f32 1.0614054, %v4801_v45 }
 0xa09   : > { %v2092_v50 = vmul.f32 1.0614054, %v4803_v47  ;;  %v4805_v54 = vpop.eup %4804 }
 0xa0a   : > { %v2095_v51 = vadd.f32 -1.4531521, %v2093_v48  ;;  %v4807_v8 = vpop.eup %4806 }
 0xa0b   : > { %v2094_v52 = vadd.f32 -1.4531521, %v2092_v50 }
 0xa0c   : > { %v2097_v21 = vmul.f32 %v4801_v45, %v2095_v51 }
 0xa0d   : > { %v2096_v55 = vmul.f32 %v4803_v47, %v2094_v52 }
 0xa0e   : > { %v2099_v56 = vadd.f32 1.4214138, %v2097_v21  ;;  %v4000_v21 = vld [vmem:[%s5640_s4 + $0x1] ss:$0 sm:$0xff] }
 0xa0f   : > { %v2098_v57 = vadd.f32 1.4214138, %v2096_v55 }
 0xa10   : > { %v2101_v58 = vmul.f32 %v4801_v45, %v2099_v56 }
 0xa11   : > { %v2100_v60 = vmul.f32 %v4803_v47, %v2098_v57  ;;  %v4001_v57 = vld [vmem:[%s5641_s5 + $0x1] ss:$0 sm:$0xff] }
 0xa12   : > { %v2103_v61 = vadd.f32 -0.28449672, %v2101_v58 }
 0xa13   : > { %v2102_v63 = vadd.f32 -0.28449672, %v2100_v60 }
 0xa14   : > { %v2105_v0 = vmul.f32 %v4801_v45, %v2103_v61 }
 0xa15   : > { %v2104_v1 = vmul.f32 %v4803_v47, %v2102_v63 }
 0xa16   : > { %v2107_v3 = vadd.f32 0.2548296, %v2105_v0 }
 0xa17   : > { %v2106_v4 = vadd.f32 0.2548296, %v2104_v1 }
 0xa18   : > { %v2109_v5 = vmul.f32 %v4801_v45, %v2107_v3  ;;  %v4005_v45 = vld [vmem:[%s5642_s6 + $0x38] sm:$0xff] }
 0xa19   : > { %v2108_v7 = vmul.f32 %v4803_v47, %v2106_v4  ;;  %v4566_v46 = vpack.c.bf16 %v4005_v45, %v4004_v42 }
 0xa1a   : > { %v2119_v10 = vmul.f32 %v4805_v54, %v2109_v5 }
 0xa1b   : > { %v2118_v11 = vmul.f32 %v4807_v8, %v2108_v7  ;;  %4567 = vmatprep.subr.bf16.mxu0 %v4566_v46 }
 0xa1c   : > { %v2121_v12 = vsub.f32 1.0, %v2119_v10  ;;  %4569 = vmatpush3.bf16.msra.mxu0 %v4566_v46 }
 0xa1d   : > { %v2120_v13 = vsub.f32 1.0, %v2118_v11 }
 0xa1e   : > { %v2125_v14 = vsub.f32 0.0, %v2121_v12 }
 0xa1f   : > { %v2124_v15 = vsub.f32 0.0, %v2120_v13 }
 0xa20   : > { %v2127_v16 = vsel %vm2123_vm5, %v2121_v12, %v2125_v14 }
 0xa21   : > { %v2129_v17 = vadd.f32 1.0, %v2127_v16  ;;  %v2126_v18 = vsel %vm2122_vm6, %v2120_v13, %v2124_v15 }
 0xa22   : > { %v2128_v20 = vadd.f32 1.0, %v2126_v18 }
 0xa23   : > { %v2131_v25 = vmul.f32 %v2129_v17, %v2079_v23 }
 0xa24   : > { %v2130_v24 = vmul.f32 %v2128_v20, %v2078_v19 }
 0xa26   : > { %4354 = vmatprep.mubr.msk.f32.mxu1 %vm564_vm0, %v2130_v24 }
 0xa27   : > { %4355 = vmatmul.mubr.msk.f32.vlgmr.msra.gmra.mrb[14].mxu1 %vm564_vm0, %v2131_v25 }
 0xafa   : > { %v4356_v26 = vpop.f32.mrb[14].mxu1 }
 0xafb   : > { %v2222_v28 = vadd.f32 %v4356_v26, %v5278_v43  ;;  %v2212_v29 = vpop.f32.mrb[15].mxu1 }
 0xafc   : > { %v2221_v30 = vadd.f32 %v2212_v29, %v5281_v44 }
 0xafd   : > { %v5345_v31 = vadd.f32 %v3997_v27, %v2222_v28 }
 0xafe   : > { %v5347_v32 = vadd.f32 %v3997_v27, %v2221_v30 }
 0xaff   : > { %v2239_v33 = vsel %vm652_vm1, %v5345_v31, 0.0 }
 0xb00   : > { %2240 = vadd.xlane.f32.xlu1 %v2239_v33  ;;  %v2236_v34 = vsel %vm652_vm1, %v5347_v32, 0.0 }
 0xb01   : > { %2237 = vadd.xlane.f32.xlu0 %v2236_v34 }
 0xb8d   : > { %v2241_v35 = vpop.xlane.xlu1 %2240 }
 0xb8e   : > { %v2243_v36 = vmul.f32 0.03125, %v2241_v35  ;;  %v2238_v62 = vpop.xlane.xlu0 %2237 }
 0xb8f   : > { %v2242_v37 = vmul.f32 0.03125, %v2238_v62 }
 0xb90   : > { %v2245_v43 = vsub.f32 %v5345_v31, %v2243_v36 }
 0xb91   : > { %v2244_v44 = vsub.f32 %v5347_v32, %v2242_v37 }
 0xb92   : > { %v2247_v2 = vmul.f32 %v2245_v43, %v2245_v43 }
 0xb93   : > { %v2246_v38 = vmul.f32 %v2244_v44, %v2244_v44 }
 0xb94   : > { %v2251_v59 = vsel %vm652_vm1, %v2247_v2, 0.0 }
 0xb95   : > { %2252 = vadd.xlane.f32.xlu1 %v2251_v59  ;;  %v2248_v39 = vsel %vm652_vm1, %v2246_v38, 0.0 }
 0xb96   : > { %2249 = vadd.xlane.f32.xlu0 %v2248_v39 }
 0xc22   : > { %v2253_v47 = vpop.xlane.xlu1 %2252 }
 0xc23   : > { %v2255_v48 = vmul.f32 0.03125, %v2253_v47  ;;  %v2250_v49 = vpop.xlane.xlu0 %2249 }
 0xc24   : > { %v2254_v50 = vmul.f32 0.03125, %v2250_v49 }
 0xc25   : > { %v2257_v51 = vadd.f32 1e-05, %v2255_v48 }
 0xc26   : > { %v2256_v22 = vadd.f32 1e-05, %v2254_v50 }
 0xc27   : > { %4808 = vrsqrt.f32 %v2257_v51 }
 0xc28   : > { %4810 = vrsqrt.f32 %v2256_v22 }
 0xc31   : > { %v4809_v52 = vpop.eup %4808 }
 0xc32   : > { %v4811_v53 = vpop.eup %4810  ;;  %v2261_v55 = vmul.f32 %v4809_v52, %v2245_v43 }
 0xc33   : > { %v2260_v56 = vmul.f32 %v4811_v53, %v2244_v44 }
 0xc34   : > { %v2269_v58 = vmul.f32 %v4000_v21, %v2261_v55 }
 0xc35   : > { %v2268_v60 = vmul.f32 %v4000_v21, %v2260_v56 }
 0xc36   : > { %v2277_v63 = vadd.f32 %v4001_v57, %v2269_v58 }
 0xc37   : > { %v2276_v61 = vadd.f32 %v4001_v57, %v2268_v60 }
 0xc39   : > { %4365 = vmatprep.mubr.msk.f32.mxu0 %vm652_vm1, %v2276_v61 }
 0xc3a   : > { %4366 = vmatmul.mubr.msk.f32.vlgmr.msra.gmra.mrb[16].mxu0 %vm652_vm1, %v2277_v63 }
 0xd0d   : > { %v4367_v0 = vpop.f32.mrb[16].mxu0 }
 0xd0e   : > { %2368 = vrot.lane.b32.xlu1 %v4367_v0, %s4924_s30  ;;  %v2355_v1 = vpop.f32.mrb[17].mxu0 }
 0xd0f   : > { %2366 = vrot.lane.b32.xlu0 %v2355_v1, %s4924_s30  ;;  %4372 = vmatprep.mubr.msk.f32.mxu0 %vm799_vm2, %v2355_v1  ;;  %v5380_v3 = vpack.i.bf16 %v4367_v0, %v2355_v1  ;;  %s5681_s30 = smov 64  }
 0xd12   : > { %2372 = vrot.lane.b32.xlu1 %v4367_v0, %s4925_s18 }
 0xd13   : > { %2374 = vrot.lane.b32.xlu0 %v2355_v1, %s4926_s26 }
 0xd16   : > { %2370 = vrot.lane.b32.xlu1 %v2355_v1, %s4925_s18  ;;  %s4078_s18 = sshll.u32 %s5043_s28, 8  ;;  %s5595_s28 = scalar_lea.sflag [#allocation3], %s539_s21 }
 0xd17   : > { %4721 = vrot.lane.b32.xlu0 %v5380_v3, %s4927_s0  ;;  %s5589_s2 = scalar_lea.hbm %s5682_s20, %s4078_s18 }
 0xd1a   : > { %2376 = vrot.lane.b32.xlu1 %v4367_v0, %s4926_s26  ;;  %s541_s26 = scalar_lea.vmem [#allocation2], %s3947_s24 }
 0xd80   : > { %v2369_v4 = vpop.permute.xlu1 %2368 }
 0xd81   : > { %v2367_v5 = vpop.permute.xlu0 %2366 }
 0xd82   : > { %v5388_v54 = vpack.i.bf16 %v2369_v4, %v2367_v5  ;;  %4379 = vmatprep.mubr.msk.f32.mxu1 %vm799_vm2, %v2367_v5 }
 0xd84   : > { %v2373_v7 = vpop.permute.xlu1 %2372  ;;  %4726 = vrot.lane.b32.xlu1 %v5388_v54, %s4927_s0 }
 0xd85   : > { %v2375_v8 = vpop.permute.xlu0 %2374 }
 0xd88   : > { %v2371_v10 = vpop.permute.xlu1 %2370 }
 0xd89   : > { %v5393_v11 = vpack.i.bf16 %v2373_v7, %v2371_v10  ;;  %v4722_v12 = vpop.permute.xlu0 %4721 }
 0xd8a   : > { %v4724_v13 = vunpack.i.h.bf16 %v4722_v12  ;;  %v4723_v14 = vunpack.i.l.bf16 %v4722_v12 }
 0xd8b   : > { %4731 = vrot.lane.b32.xlu0 %v5393_v11, %s4927_s0 }
 0xd8c   : > { %v4570_v15 = vpack.c.bf16 %v4724_v13, %v4723_v14  ;;  %v2377_v16 = vpop.permute.xlu1 %2376 }
 0xd8d   : > { %v5397_v17 = vpack.i.bf16 %v2377_v16, %v2375_v8 }
 0xd8e   : > { %4572 = vmatprep.subr.msk.bf16.mxu0 %vm5164_vm3, %v4570_v15 }
 0xd8f   : > { %4736 = vrot.lane.b32.xlu1 %v5397_v17, %s4927_s0  ;;  %4575 = vmatpush3.bf16.xpose.msk.msra.mxu0 %vm5164_vm3, %v4570_v15  ;;  %s3881_s0 = sshll.u32 %s541_s26, 4  ;;  %s5591_s0 = int_to_ptr.vmem [resolvable:$true] %s3881_s0 }
 0xd90   : > { %s4860_s24 = scalar_lea.vmem %s5591_s0, 256  ;;  %p4867_p0 = scmp.lt.s32.totalorder %s5591_s0, %s4865_s17 }
 0xd91   : > { %p4861_p11 = scmp.ne.s32.totalorder %s5591_s0, %s4860_s24  ;;  %p4868_p1 = scmp.lt.s32.totalorder %s4866_s27, %s4860_s24 }
 0xd93   : > { %p4862_p12 = pnand %p4861_p11, %p5060_p5  ;;  %p4869_p2 = por %p4868_p1, %p4867_p0 }
 0xd95   : > { %p4863_p13 = pneg %p4862_p12 }
 0xd96   : > { %4373 = vmatmul.mubr.msk.f32.vlgmr.msra.gmra.mrb[18].mxu0 %vm799_vm2, %v4367_v0 }
 0xd97   : > { %4386 = vmatprep.mubr.msk.f32.mxu0 %vm799_vm2, %v2371_v10  ;;  %p4870_p3 = pnand %p4869_p2, %p4863_p13 }
 0xdf6   : > { %v4727_v18 = vpop.permute.xlu1 %4726 }
 0xdf7   : > { %v4729_v19 = vunpack.i.h.bf16 %v4727_v18  ;;  %v4728_v20 = vunpack.i.l.bf16 %v4727_v18 }
 0xdf9   : > { %v4576_v23 = vpack.c.bf16 %v4729_v19, %v4728_v20 }
 0xdfb   : > { %4578 = vmatprep.subr.msk.bf16.mxu1 %vm5164_vm3, %v4576_v23 }
 0xdfc   : > { %4581 = vmatpush3.bf16.xpose.msk.msra.mxu1 %vm5164_vm3, %v4576_v23 }
 0xdfd   : > { %v4732_v24 = vpop.permute.xlu0 %4731 }
 0xdfe   : > { %v4734_v25 = vunpack.i.h.bf16 %v4732_v24  ;;  %v4733_v26 = vunpack.i.l.bf16 %v4732_v24 }
 0xe00   : > { %v4582_v27 = vpack.c.bf16 %v4734_v25, %v4733_v26 }
 0xe01   : > { %v4737_v28 = vpop.permute.xlu1 %4736 }
 0xe02   : > { %v4739_v29 = vunpack.i.h.bf16 %v4737_v28  ;;  %v4738_v30 = vunpack.i.l.bf16 %v4737_v28  ;;  %4584 = vmatprep.subr.msk.bf16.mxu0 %vm5164_vm3, %v4582_v27 }
 0xe03   : > { %4380 = vmatmul.mubr.msk.f32.vlgmr.msra.gmra.mrb[16].mxu1 %vm799_vm2, %v2369_v4  ;;  %4587 = vmatpush3.bf16.xpose.msk.msra.mxu0 %vm5164_vm3, %v4582_v27 }
 0xe04   : > { %v4588_v33 = vpack.c.bf16 %v4739_v29, %v4738_v30  ;;  %4393 = vmatprep.mubr.msk.f32.mxu1 %vm799_vm2, %v2375_v8 }
 0xe06   : > { %4590 = vmatprep.subr.msk.bf16.mxu1 %vm5164_vm3, %v4588_v33 }
 0xe07   : > { %4593 = vmatpush3.bf16.xpose.msk.msra.mxu1 %vm5164_vm3, %v4588_v33 }
 0xe0a   : > { %4387 = vmatmul.mubr.msk.f32.vlgmr.msra.gmra.mrb[20].mxu0 %vm799_vm2, %v2373_v7 }
 0xe0e   : > { %4394 = vmatmul.mubr.msk.f32.vlgmr.msra.gmra.mrb[18].mxu1 %vm799_vm2, %v2377_v16 }
 0xe69   : > { %v4374_v34 = vpop.f32.mrb[18].mxu0 }
 0xe6a   : > { %v2727_v35 = vmul.f32 0.35355338, %v4374_v34  ;;  %v2456_v36 = vpop.f32.mrb[19].mxu0 }
 0xe6b   : > { %v2726_v62 = vmul.f32 0.35355338, %v2456_v36 }
 0xe6c   : > { %v2737_v37 = vsel %vm1152_vm4, %v2727_v35, -inf }
 0xe6d   : > { %2738 = vmax.xlane.f32.xlu1 %v2737_v37  ;;  %v2734_v43 = vsel %vm1152_vm4, %v2726_v62, -inf }
 0xe6e   : > { %2735 = vmax.xlane.f32.xlu0 %v2734_v43 }
 0xed6   : > { %v4381_v44 = vpop.f32.mrb[16].mxu1 }
 0xed7   : > { %v2729_v2 = vmul.f32 0.35355338, %v4381_v44  ;;  %v2543_v38 = vpop.f32.mrb[17].mxu1 }
 0xed8   : > { %v2728_v59 = vmul.f32 0.35355338, %v2543_v38 }
 0xed9   : > { %v2743_v6 = vsel %vm1152_vm4, %v2729_v2, -inf }
 0xeda   : > { %2744 = vmax.xlane.f32.xlu0 %v2743_v6  ;;  %v2740_v9 = vsel %vm1152_vm4, %v2728_v59, -inf }
 0xedd   : > { %v4388_v39 = vpop.f32.mrb[20].mxu0 }
 0xede   : > { %v2731_v40 = vmul.f32 0.35355338, %v4388_v39  ;;  %2741 = vmax.xlane.f32.xlu0 %v2740_v9  ;;  %v2630_v41 = vpop.f32.mrb[21].mxu0 }
 0xedf   : > { %v2730_v42 = vmul.f32 0.35355338, %v2630_v41 }
 0xee0   : > { %v2749_v45 = vsel %vm1152_vm4, %v2731_v40, -inf }
 0xee1   : > { %v4395_v46 = vpop.f32.mrb[18].mxu1  ;;  %2750 = vmax.xlane.f32.xlu1 %v2749_v45  ;;  %v2746_v47 = vsel %vm1152_vm4, %v2730_v42, -inf }
 0xee2   : > { %v2733_v48 = vmul.f32 0.35355338, %v4395_v46  ;;  %v2717_v49 = vpop.f32.mrb[19].mxu1  ;;  %2747 = vmax.xlane.f32.xlu0 %v2746_v47 }
 0xee3   : > { %v2732_v50 = vmul.f32 0.35355338, %v2717_v49 }
 0xee4   : > { %v2755_v51 = vsel %vm1152_vm4, %v2733_v48, -inf }
 0xee5   : > { %2756 = vmax.xlane.f32.xlu1 %v2755_v51  ;;  %v2752_v22 = vsel %vm1152_vm4, %v2732_v50, -inf }
 0xee6   : > { %2753 = vmax.xlane.f32.xlu0 %v2752_v22 }
 0xefa   : > { %v2739_v52 = vpop.xlane.xlu1 %2738 }
 0xefb   : > { %v2759_v21 = vsub.f32 %v2727_v35, %v2739_v52  ;;  %v2736_v53 = vpop.xlane.xlu0 %2735 }
 0xefc   : > { %v2758_v55 = vsub.f32 %v2726_v62, %v2736_v53 }
 0xefd   : > { %v2768_v56 = vmul.f32 1.442695, %v2759_v21 }
 0xefe   : > { %v2766_v57 = vmul.f32 1.442695, %v2758_v55 }
 0xeff   : > { %4812 = vpow2.f32 %v2768_v56 }
 0xf00   : > { %4814 = vpow2.f32 %v2766_v57 }
 0xf09   : > { %v5431_v58 = vpop.eup %4812 }
 0xf0a   : > { %v4815_v60 = vpop.eup %4814  ;;  %v2785_v61 = vsel %vm1152_vm4, %v5431_v58, 0.0 }
 0xf0b   : > { %2786 = vadd.xlane.f32.xlu1 %v2785_v61  ;;  %v2782_v63 = vsel %vm1152_vm4, %v4815_v60, 0.0 }
 0xf0c   : > { %2783 = vadd.xlane.f32.xlu0 %v2782_v63 }
 0xf67   : > { %v2745_v0 = vpop.xlane.xlu0 %2744 }
 0xf68   : > { %v2761_v1 = vsub.f32 %v2729_v2, %v2745_v0 }
 0xf6a   : > { %v2772_v4 = vmul.f32 1.442695, %v2761_v1 }
 0xf6b   : > { %v2742_v5 = vpop.xlane.xlu0 %2741 }
 0xf6c   : > { %4816 = vpow2.f32 %v2772_v4  ;;  %v2760_v7 = vsub.f32 %v2728_v59, %v2742_v5 }
 0xf6e   : > { %v2770_v8 = vmul.f32 1.442695, %v2760_v7  ;;  %v2751_v10 = vpop.xlane.xlu1 %2750 }
 0xf6f   : > { %v2763_v12 = vsub.f32 %v2731_v40, %v2751_v10  ;;  %v2748_v13 = vpop.xlane.xlu0 %2747 }
 0xf70   : > { %4818 = vpow2.f32 %v2770_v8  ;;  %v2762_v14 = vsub.f32 %v2730_v42, %v2748_v13  ;;  %v4032_v13 = vld [vmem:[%s5643_s7 + $0x20] sm:$0xff] }
 0xf71   : > { %v2776_v15 = vmul.f32 1.442695, %v2763_v12 }
 0xf72   : > { %v2774_v16 = vmul.f32 1.442695, %v2762_v14  ;;  %v2757_v18 = vpop.xlane.xlu1 %2756  ;;  %v4033_v14 = vld [vmem:[%s5643_s7 + $0x28] sm:$0xff] }
 0xf73   : > { %4820 = vpow2.f32 %v2776_v15  ;;  %v2765_v19 = vsub.f32 %v2733_v48, %v2757_v18  ;;  %v2754_v20 = vpop.xlane.xlu0 %2753  ;;  %v4034_v15 = vld [vmem:[%s5643_s7 + $0x30] sm:$0xff] }
 0xf74   : > { %4822 = vpow2.f32 %v2774_v16  ;;  %v2764_v23 = vsub.f32 %v2732_v50, %v2754_v20  ;;  %v4035_v16 = vld [vmem:[%s5643_s7 + $0x38] sm:$0xff] }
 0xf75   : > { %v2780_v24 = vmul.f32 1.442695, %v2765_v19 }
 0xf76   : > { %v5436_v25 = vpop.eup %4816  ;;  %v2778_v26 = vmul.f32 1.442695, %v2764_v23 }
 0xf77   : > { %4824 = vpow2.f32 %v2780_v24  ;;  %v2791_v27 = vsel %vm1152_vm4, %v5436_v25, 0.0 }
 0xf78   : > { %4826 = vpow2.f32 %v2778_v26  ;;  %2792 = vadd.xlane.f32.xlu1 %v2791_v27 }
 0xf7a   : > { %v4819_v28 = vpop.eup %4818 }
 0xf7b   : > { %v2788_v29 = vsel %vm1152_vm4, %v4819_v28, 0.0 }
 0xf7c   : > { %2789 = vadd.xlane.f32.xlu0 %v2788_v29 }
 0xf7d   : > { %v5441_v30 = vpop.eup %4820 }
 0xf7e   : > { %v5443_v33 = vpop.eup %4822  ;;  %v2797_v34 = vsel %vm1152_vm4, %v5441_v30, 0.0 }
 0xf7f   : > { %2798 = vadd.xlane.f32.xlu1 %v2797_v34  ;;  %v2794_v35 = vsel %vm1152_vm4, %v5443_v33, 0.0 }
 0xf80   : > { %2795 = vadd.xlane.f32.xlu0 %v2794_v35 }
 0xf81   : > { %v5449_v36 = vpop.eup %4824 }
 0xf82   : > { %v4827_v62 = vpop.eup %4826  ;;  %v2803_v37 = vsel %vm1152_vm4, %v5449_v36, 0.0 }
 0xf83   : > { %2804 = vadd.xlane.f32.xlu1 %v2803_v37  ;;  %v2800_v43 = vsel %vm1152_vm4, %v4827_v62, 0.0 }
 0xf84   : > { %2801 = vadd.xlane.f32.xlu0 %v2800_v43 }
 0xf94   : > { %4746 = vrot.lane.b32.xlu1 %v5388_v54, %s5681_s30 }
 0xf98   : > { %4751 = vrot.lane.b32.xlu1 %v5393_v11, %s5681_s30  ;;  %v2787_v59 = vpop.xlane.xlu1 %2786 }
 0xf99   : > { %v2784_v44 = vpop.xlane.xlu0 %2783 }
 0xf9a   : > { %4828 = vrcp.f32 %v2784_v44  ;;  %4741 = vrot.lane.b32.xlu0 %v5380_v3, %s5681_s30 }
 0xf9c   : > { %4756 = vrot.lane.b32.xlu1 %v5397_v17, %s5681_s30 }
 0xfa4   : > { %v4829_v2 = vpop.eup %4828 }
 0xfa5   : > { %v2814_v38 = vmul.f32 %v4829_v2, %v4815_v60 }
 0xfa7   : > { %4400 = vmatprep.mubr.msk.f32.mxu0 %vm1152_vm4, %v2814_v38 }
0x1005   : > { %v2793_v6 = vpop.xlane.xlu1 %2792 }
0x1009   : > { %v2790_v39 = vpop.xlane.xlu0 %2789 }
0x100a   : > { %4830 = vrcp.f32 %v2790_v39 }
0x100b   : > { %4832 = vrcp.f32 %v2793_v6 }
0x100c   : > { %v2799_v54 = vpop.xlane.xlu1 %2798  ;;  %4834 = vrcp.f32 %v2787_v59 }
0x100d   : > { %v2796_v9 = vpop.xlane.xlu0 %2795 }
0x100e   : > { %4836 = vrcp.f32 %v2796_v9 }
0x1010   : > { %v2805_v11 = vpop.xlane.xlu1 %2804 }
0x1011   : > { %v2802_v40 = vpop.xlane.xlu0 %2801 }
0x1012   : > { %4838 = vrcp.f32 %v2802_v40 }
0x1013   : > { %4840 = vrcp.f32 %v2799_v54 }
0x1014   : > { %v4831_v3 = vpop.eup %4830  ;;  %v4747_v41 = vpop.permute.xlu1 %4746  ;;  %4842 = vrcp.f32 %v2805_v11  ;;  %v4045_v11 = vld [vmem:[%s5644_s8 + $0x1] ss:$0 sm:$0xff] }
0x1015   : > { %v4749_v17 = vunpack.i.h.bf16 %v4747_v41  ;;  %v4748_v42 = vunpack.i.l.bf16 %v4747_v41  ;;  %v4742_v45 = vpop.permute.xlu0 %4741  ;;  %v2816_v46 = vmul.f32 %v4831_v3, %v4819_v28  ;;  %v4833_v50 = vpop.eup %4832 }
0x1016   : > { %v4744_v47 = vunpack.i.h.bf16 %v4742_v45  ;;  %v4743_v48 = vunpack.i.l.bf16 %v4742_v45  ;;  %v4835_v52 = vpop.eup %4834  ;;  %v2817_v56 = vmul.f32 %v4833_v50, %v5436_v25 }
0x1017   : > { %v4598_v49 = vpack.c.bf16 %v4749_v17, %v4748_v42  ;;  %4407 = vmatprep.mubr.msk.f32.mxu1 %vm1152_vm4, %v2816_v46  ;;  %v2815_v61 = vmul.f32 %v4835_v52, %v5431_v58 }
0x1018   : > { %v4594_v51 = vpack.c.bf16 %v4744_v47, %v4743_v48  ;;  %v4752_v22 = vpop.permute.xlu1 %4751  ;;  %v4837_v55 = vpop.eup %4836 }
0x1019   : > { %v4754_v21 = vunpack.i.h.bf16 %v4752_v22  ;;  %v4753_v53 = vunpack.i.l.bf16 %v4752_v22  ;;  %4599 = vmatprep.subr.bf16.mxu1 %v4598_v49  ;;  %v2818_v5 = vmul.f32 %v4837_v55, %v5443_v33 }
0x101a   : > { %4595 = vmatprep.subr.bf16.mxu0 %v4594_v51  ;;  %4601 = vmatpush3.bf16.msra.mxu1 %v4598_v49 }
0x101b   : > { %v4602_v57 = vpack.c.bf16 %v4754_v21, %v4753_v53  ;;  %4597 = vmatpush3.bf16.msra.mxu0 %v4594_v51 }
0x101c   : > { %v4839_v60 = vpop.eup %4838  ;;  %v4757_v63 = vpop.permute.xlu1 %4756 }
0x101d   : > { %v4841_v0 = vpop.eup %4840  ;;  %v4759_v1 = vunpack.i.h.bf16 %v4757_v63  ;;  %v4758_v4 = vunpack.i.l.bf16 %v4757_v63  ;;  %4408 = vmatmul.mubr.msk.f32.vlgmr.msra.gmra.mrb[20].mxu1 %vm1152_vm4, %v2817_v56  ;;  %4603 = vmatprep.subr.bf16.mxu0 %v4602_v57  ;;  %v2820_v7 = vmul.f32 %v4839_v60, %v4827_v62  ;;  %v4051_v60 = vld [vmem:[%s5647_s11 + $0x28] sm:$0xff]  ;;  %v4052_v63 = vld [vmem:[%s5647_s11 + $0x30] sm:$0xff] }
0x101e   : > { %4401 = vmatmul.mubr.msk.f32.vlgmr.msra.gmra.mrb[22].mxu0 %vm1152_vm4, %v2815_v61  ;;  %v4843_v10 = vpop.eup %4842  ;;  %v2819_v12 = vmul.f32 %v4841_v0, %v5441_v30  ;;  %v4053_v0 = vld [vmem:[%s5647_s11 + $0x38] sm:$0xff] }
0x101f   : > { %v4606_v8 = vpack.c.bf16 %v4759_v1, %v4758_v4  ;;  %4605 = vmatpush3.bf16.msra.mxu0 %v4602_v57  ;;  %4414 = vmatprep.mubr.msk.f32.mxu0 %vm1152_vm4, %v2818_v5  ;;  %v2821_v58 = vmul.f32 %v4843_v10, %v5449_v36  ;;  %v4050_v57 = vld [vmem:[%s5647_s11 + $0x20] sm:$0xff]  ;;  %v4614_v1 = vpack.c.bf16 %v4053_v0, %v4052_v63 }
0x1020   : > { %4421 = vmatprep.mubr.msk.f32.mxu1 %vm1152_vm4, %v2820_v7  ;;  %4424 = vmatprep.subr.mxu0 %v4032_v13  ;;  %v4610_v61 = vpack.c.bf16 %v4051_v60, %v4050_v57 }
0x1021   : > { %4607 = vmatprep.subr.bf16.mxu1 %v4606_v8 }
0x1022   : > { %4415 = vmatmul.mubr.msk.f32.vlgmr.msra.gmra.mrb[24].mxu0 %vm1152_vm4, %v2819_v12  ;;  %4609 = vmatpush3.bf16.msra.mxu1 %v4606_v8 }
0x1023   : > { %4429 = vmatprep.subr.mxu1 %v4033_v14  ;;  %4425 = vmatpush3.msra.mxu0 %v4032_v13  ;;  %v4048_v13 = vld [vmem:[%s5645_s9 + $0x1] ss:$0 sm:$0xff] }
0x1024   : > { %4434 = vmatprep.subr.mxu0 %v4034_v15 }
0x1025   : > { %4422 = vmatmul.mubr.msk.f32.vlgmr.msra.gmra.mrb[22].mxu1 %vm1152_vm4, %v2821_v58 }
0x1026   : > { %4430 = vmatpush3.msra.mxu1 %v4033_v14 }
0x1027   : > { %4439 = vmatprep.subr.mxu1 %v4035_v16 }
0x10f0   : > { %v4409_v18 = vpop.f32.mrb[20].mxu1 }
0x10f1   : > { %v4402_v19 = vpop.f32.mrb[22].mxu0  ;;  %v2987_v20 = vpop.f32.mrb[21].mxu1 }
0x10f2   : > { %v2900_v23 = vpop.f32.mrb[23].mxu0  ;;  %4431 = vmatprep.mubr.msk.f32.mxu1 %vm799_vm2, %v2987_v20 }
0x10f3   : > { %4426 = vmatprep.mubr.msk.f32.mxu0 %vm799_vm2, %v2900_v23  ;;  %4432 = vmatmul.mubr.msk.f32.vlgmr.msra.gmra.mrb[24].mxu1 %vm799_vm2, %v4409_v18 }
0x10f4   : > { %4427 = vmatmul.mubr.msk.f32.vlgmr.msra.gmra.mrb[26].mxu0 %vm799_vm2, %v4402_v19  ;;  %4440 = vmatpush3.msra.mxu1 %v4035_v16 }
0x10f5   : > { %v4416_v24 = vpop.f32.mrb[24].mxu0  ;;  %4435 = vmatpush3.msra.mxu0 %v4034_v15  ;;  %v4049_v15 = vld [vmem:[%s5646_s10 + $0x1] ss:$0 sm:$0xff] }
0x10f6   : > { %v3074_v25 = vpop.f32.mrb[25].mxu0  ;;  %4611 = vmatprep.subr.bf16.mxu0 %v4610_v61 }
0x10f7   : > { %4436 = vmatprep.mubr.msk.f32.mxu0 %vm799_vm2, %v3074_v25  ;;  %v4058_v25 = vld [vmem:[%s5649_s13 + $0x40] sm:$0xff] }
0x10f8   : > { %v4423_v26 = vpop.f32.mrb[22].mxu1  ;;  %4437 = vmatmul.mubr.msk.f32.vlgmr.msra.gmra.mrb[28].mxu0 %vm799_vm2, %v4416_v24 }
0x10f9   : > { %v3161_v27 = vpop.f32.mrb[23].mxu1  ;;  %4613 = vmatpush3.bf16.msra.mxu0 %v4610_v61 }
0x10fa   : > { %4441 = vmatprep.mubr.msk.f32.mxu1 %vm799_vm2, %v3161_v27  ;;  %4615 = vmatprep.subr.bf16.mxu0 %v4614_v1 }
0x10fb   : > { %4442 = vmatmul.mubr.msk.f32.vlgmr.msra.gmra.mrb[26].mxu1 %vm799_vm2, %v4423_v26  ;;  %v4059_v26 = vld [vmem:[%s5649_s13 + $0x48] sm:$0xff] }
0x10fc   : > { %v4618_v27 = vpack.c.bf16 %v4059_v26, %v4058_v25 }
0x10fd   : > { %4617 = vmatpush3.bf16.msra.mxu0 %v4614_v1 }
0x10fe   : > { %4619 = vmatprep.subr.bf16.mxu1 %v4618_v27 }
0x10ff   : > { %4621 = vmatpush3.bf16.msra.mxu1 %v4618_v27 }
0x11c6   : > { %v4433_v28 = vpop.f32.mrb[24].mxu1 }
0x11c7   : > { %v3507_v29 = vsel %vm652_vm1, %v4433_v28, 0.0  ;;  %v4428_v30 = vpop.f32.mrb[26].mxu0  ;;  %v3328_v33 = vpop.f32.mrb[25].mxu1  ;;  %v4060_v28 = vld [vmem:[%s5649_s13 + $0x50] sm:$0xff] }
0x11c8   : > { %v3506_v34 = vsel %vm652_vm1, %v4428_v30, 0.0  ;;  %v3500_v35 = vsel %vm652_vm1, %v3328_v33, 0.0  ;;  %v3247_v36 = vpop.f32.mrb[27].mxu0  ;;  %v4062_v33 = vld [vmem:[%s5649_s13 + $0x60] sm:$0xff] }
0x11c9   : > { %v3508_v62 = vadd.f32 %v3507_v29, %v3506_v34  ;;  %v3499_v37 = vsel %vm652_vm1, %v3247_v36, 0.0  ;;  %v4061_v29 = vld [vmem:[%s5649_s13 + $0x58] sm:$0xff]  ;;  %v4063_v34 = vld [vmem:[%s5649_s13 + $0x68] sm:$0xff]  ;;  %v4064_v36 = vld [vmem:[%s5649_s13 + $0x70] sm:$0xff] }
0x11ca   : > { %v3501_v43 = vadd.f32 %v3500_v35, %v3499_v37  ;;  %v4622_v30 = vpack.c.bf16 %v4061_v29, %v4060_v28  ;;  %v4626_v35 = vpack.c.bf16 %v4063_v34, %v4062_v33  ;;  %v4069_v33 = vld [vmem:[%s5650_s14 + $0x1] ss:$0 sm:$0xff] }
0x11cb   : > { %v4438_v44 = vpop.f32.mrb[28].mxu0 }
0x11cc   : > { %v3509_v2 = vsel %vm652_vm1, %v4438_v44, 0.0  ;;  %v3409_v38 = vpop.f32.mrb[29].mxu0  ;;  %4623 = vmatprep.subr.bf16.mxu1 %v4622_v30 }
0x11cd   : > { %v3510_v59 = vadd.f32 %v3509_v2, %v3508_v62  ;;  %v3502_v6 = vsel %vm652_vm1, %v3409_v38, 0.0  ;;  %4625 = vmatpush3.bf16.msra.mxu1 %v4622_v30  ;;  %v4065_v62 = vld [vmem:[%s5649_s13 + $0x78] sm:$0xff] }
0x11ce   : > { %v3503_v39 = vadd.f32 %v3502_v6, %v3501_v43  ;;  %v4443_v54 = vpop.f32.mrb[26].mxu1  ;;  %4627 = vmatprep.subr.bf16.mxu1 %v4626_v35  ;;  %v4630_v37 = vpack.c.bf16 %v4065_v62, %v4064_v36  ;;  %v4055_v43 = vld [vmem:[%s5648_s12 + $0x1] ss:$0 sm:$0xff] }
0x11cf   : > { %v3511_v9 = vsel %vm652_vm1, %v4443_v54, 0.0  ;;  %v3490_v40 = vpop.f32.mrb[27].mxu1 }
0x11d0   : > { %v3512_v3 = vadd.f32 %v3511_v9, %v3510_v59  ;;  %v3504_v41 = vsel %vm652_vm1, %v3490_v40, 0.0 }
0x11d1   : > { %v3505_v17 = vadd.f32 %v3504_v41, %v3503_v39  ;;  %4629 = vmatpush3.bf16.msra.mxu1 %v4626_v35 }
0x11d2   : > { %v3522_v42 = vadd.f32 %v4045_v11, %v3512_v3  ;;  %4631 = vmatprep.subr.bf16.mxu1 %v4630_v37 }
0x11d3   : > { %v3521_v45 = vadd.f32 %v4045_v11, %v3505_v17 }
0x11d4   : > { %v5507_v46 = vadd.f32 %v3522_v42, %v5345_v31 }
0x11d5   : > { %v5510_v47 = vadd.f32 %v3521_v45, %v5347_v32  ;;  %4633 = vmatpush3.bf16.msra.mxu1 %v4630_v37 }
0x11d6   : > { %v3532_v48 = vsel %vm652_vm1, %v5507_v46, 0.0 }
0x11d7   : > { %3533 = vadd.xlane.f32.xlu1 %v3532_v48  ;;  %v3529_v49 = vsel %vm652_vm1, %v5510_v47, 0.0 }
0x11d8   : > { %3530 = vadd.xlane.f32.xlu0 %v3529_v49 }
0x1264   : > { %v3534_v50 = vpop.xlane.xlu1 %3533 }
0x1265   : > { %v3536_v51 = vmul.f32 0.03125, %v3534_v50  ;;  %v3531_v22 = vpop.xlane.xlu0 %3530 }
0x1266   : > { %v3535_v52 = vmul.f32 0.03125, %v3531_v22 }
0x1267   : > { %v3538_v21 = vsub.f32 %v5507_v46, %v3536_v51 }
0x1268   : > { %v3537_v31 = vsub.f32 %v5510_v47, %v3535_v52 }
0x1269   : > { %v3540_v55 = vmul.f32 %v3538_v21, %v3538_v21 }
0x126a   : > { %v3539_v53 = vmul.f32 %v3537_v31, %v3537_v31 }
0x126b   : > { %v3544_v56 = vsel %vm652_vm1, %v3540_v55, 0.0 }
0x126c   : > { %v3541_v32 = vsel %vm652_vm1, %v3539_v53, 0.0 }
0x126d   : > { %3542 = vadd.xlane.f32.xlu0 %v3541_v32 }
0x1271   : > { %3545 = vadd.xlane.f32.xlu0 %v3544_v56 }
0x12fa   : > { %v3543_v4 = vpop.xlane.xlu0 %3542 }
0x12fb   : > { %v3547_v5 = vmul.f32 0.03125, %v3543_v4 }
0x12fd   : > { %v3549_v7 = vadd.f32 1e-05, %v3547_v5 }
0x12fe   : > { %v3546_v8 = vpop.xlane.xlu0 %3545 }
0x12ff   : > { %4844 = vrsqrt.f32 %v3549_v7  ;;  %v3548_v10 = vmul.f32 0.03125, %v3546_v8 }
0x1301   : > { %v3550_v12 = vadd.f32 1e-05, %v3548_v10 }
0x1303   : > { %4846 = vrsqrt.f32 %v3550_v12 }
0x1309   : > { %v4845_v58 = vpop.eup %4844 }
0x130a   : > { %v3553_v14 = vmul.f32 %v4845_v58, %v3537_v31 }
0x130c   : > { %v3561_v16 = vmul.f32 %v4048_v13, %v3553_v14 }
0x130d   : > { %v4847_v18 = vpop.eup %4846 }
0x130e   : > { %v3554_v19 = vmul.f32 %v4847_v18, %v3538_v21  ;;  %v3569_v20 = vadd.f32 %v4049_v15, %v3561_v16 }
0x1310   : > { %v3562_v23 = vmul.f32 %v4048_v13, %v3554_v19  ;;  %4452 = vmatprep.mubr.msk.f32.mxu0 %vm652_vm1, %v3569_v20 }
0x1312   : > { %v3570_v24 = vadd.f32 %v4049_v15, %v3562_v23 }
0x1314   : > { %4453 = vmatmul.mubr.msk.f32.vlgmr.msra.gmra.mrb[30].mxu0 %vm652_vm1, %v3570_v24 }
0x13e7   : > { %v4454_v44 = vpop.f32.mrb[30].mxu0 }
0x13e8   : > { %v3662_v2 = vadd.f32 %v4454_v44, %v4055_v43  ;;  %v3656_v38 = vpop.f32.mrb[31].mxu0 }
0x13e9   : > { %v3657_v59 = vadd.f32 %v4055_v43, %v3656_v38 }
0x13ea   : > { %v3668_v6 = vmul.f32 0.70710677, %v3662_v2  ;;  %v3666_v27 = vmul.f32 0.5, %v3662_v2 }
0x13eb   : > { %v3667_v39 = vmul.f32 0.70710677, %v3657_v59  ;;  %v3665_v25 = vmul.f32 0.5, %v3657_v59 }
0x13ec   : > { %v3670_v54 = vand.u32 2147483647, %v3668_v6  ;;  %vm3710_vm7 = vcmp.ge.f32.partialorder %v3668_v6, 0.0 }
0x13ed   : > { %v3669_v9 = vand.u32 2147483647, %v3667_v39  ;;  %vm3709_vm8 = vcmp.ge.f32.partialorder %v3667_v39, 0.0 }
0x13ee   : > { %v3672_v11 = vmul.f32 0.3275911, %v3670_v54  ;;  %v3698_v17 = vsub.f32 0.0, %v3670_v54 }
0x13ef   : > { %v3671_v40 = vmul.f32 0.3275911, %v3669_v9  ;;  %v3697_v42 = vsub.f32 0.0, %v3669_v9 }
0x13f0   : > { %v3674_v3 = vadd.f32 1.0, %v3672_v11  ;;  %v3700_v48 = vmul.f32 %v3698_v17, %v3670_v54 }
0x13f1   : > { %v3673_v41 = vadd.f32 1.0, %v3671_v40  ;;  %v3699_v51 = vmul.f32 %v3697_v42, %v3669_v9 }
0x13f2   : > { %4848 = vrcp.f32 %v3674_v3  ;;  %v3703_v21 = vmul.f32 1.442695, %v3700_v48 }
0x13f3   : > { %4850 = vrcp.f32 %v3673_v41  ;;  %v3701_v32 = vmul.f32 1.442695, %v3699_v51 }
0x13f4   : > { %4852 = vpow2.f32 %v3703_v21 }
0x13f5   : > { %4854 = vpow2.f32 %v3701_v32 }
0x13fc   : > { %v4849_v45 = vpop.eup %4848 }
0x13fd   : > { %v4851_v49 = vpop.eup %4850  ;;  %v3680_v50 = vmul.f32 1.0614054, %v4849_v45 }
0x13fe   : > { %v3679_v22 = vmul.f32 1.0614054, %v4851_v49  ;;  %v4853_v10 = vpop.eup %4852 }
0x13ff   : > { %v3682_v52 = vadd.f32 -1.4531521, %v3680_v50  ;;  %v4855_v58 = vpop.eup %4854 }
0x1400   : > { %v3681_v31 = vadd.f32 -1.4531521, %v3679_v22  ;;  %v4071_v22 = vld [vmem:[%s5652_s16] ss:$0 sm:$0xff] }
0x1401   : > { %v3684_v53 = vmul.f32 %v4849_v45, %v3682_v52 }
0x1402   : > { %v3683_v55 = vmul.f32 %v4851_v49, %v3681_v31 }
0x1403   : > { %v3686_v56 = vadd.f32 1.4214138, %v3684_v53 }
0x1404   : > { %v3685_v57 = vadd.f32 1.4214138, %v3683_v55 }
0x1405   : > { %v3688_v60 = vmul.f32 %v4849_v45, %v3686_v56 }
0x1406   : > { %v3687_v61 = vmul.f32 %v4851_v49, %v3685_v57 }
0x1407   : > { %v3690_v63 = vadd.f32 -0.28449672, %v3688_v60 }
0x1408   : > { %v3689_v0 = vadd.f32 -0.28449672, %v3687_v61 }
0x1409   : > { %v3692_v1 = vmul.f32 %v4849_v45, %v3690_v63 }
0x140a   : > { %v3691_v4 = vmul.f32 %v4851_v49, %v3689_v0 }
0x140b   : > { %v3694_v5 = vadd.f32 0.2548296, %v3692_v1 }
0x140c   : > { %v3693_v7 = vadd.f32 0.2548296, %v3691_v4 }
0x140d   : > { %v3696_v8 = vmul.f32 %v4849_v45, %v3694_v5 }
0x140e   : > { %v3695_v12 = vmul.f32 %v4851_v49, %v3693_v7  ;;  %v4070_v49 = vld [vmem:[%s5651_s15] ss:$0 sm:$0xff] }
0x140f   : > { %v3706_v13 = vmul.f32 %v4853_v10, %v3696_v8 }
0x1410   : > { %v3705_v14 = vmul.f32 %v4855_v58, %v3695_v12 }
0x1411   : > { %v3708_v15 = vsub.f32 1.0, %v3706_v13 }
0x1412   : > { %v3707_v16 = vsub.f32 1.0, %v3705_v14 }
0x1413   : > { %v3712_v18 = vsub.f32 0.0, %v3708_v15 }
0x1414   : > { %v3711_v19 = vsub.f32 0.0, %v3707_v16 }
0x1415   : > { %v3714_v20 = vsel %vm3710_vm7, %v3708_v15, %v3712_v18 }
0x1416   : > { %v3716_v23 = vadd.f32 1.0, %v3714_v20  ;;  %v3713_v24 = vsel %vm3709_vm8, %v3707_v16, %v3711_v19 }
0x1417   : > { %v3715_v26 = vadd.f32 1.0, %v3713_v24 }
0x1418   : > { %v3718_v29 = vmul.f32 %v3716_v23, %v3666_v27 }
0x1419   : > { %v3717_v28 = vmul.f32 %v3715_v26, %v3665_v25 }
0x141b   : > { %4471 = vmatprep.mubr.msk.f32.mxu1 %vm564_vm0, %v3717_v28 }
0x141c   : > { %4472 = vmatmul.mubr.msk.f32.vlgmr.msra.gmra.mrb[28].mxu1 %vm564_vm0, %v3718_v29 }
0x14ef   : > { %v4473_v30 = vpop.f32.mrb[28].mxu1 }
0x14f0   : > { %v3810_v34 = vadd.f32 %v4473_v30, %v5507_v46  ;;  %v3800_v35 = vpop.f32.mrb[29].mxu1 }
0x14f1   : > { %v3809_v36 = vadd.f32 %v3800_v35, %v5510_v47 }
0x14f2   : > { %v3820_v62 = vadd.f32 %v4069_v33, %v3810_v34 }
0x14f3   : > { %v3819_v37 = vadd.f32 %v4069_v33, %v3809_v36 }
0x14f4   : > { %v3826_v43 = vsel %vm652_vm1, %v3820_v62, 0.0 }
0x14f5   : > { %3827 = vadd.xlane.f32.xlu1 %v3826_v43  ;;  %v3823_v44 = vsel %vm652_vm1, %v3819_v37, 0.0 }
0x14f6   : > { %3824 = vadd.xlane.f32.xlu0 %v3823_v44 }
0x1582   : > { %v3828_v2 = vpop.xlane.xlu1 %3827 }
0x1583   : > { %v3830_v38 = vmul.f32 0.03125, %v3828_v2  ;;  %v3825_v59 = vpop.xlane.xlu0 %3824 }
0x1584   : > { %v3829_v6 = vmul.f32 0.03125, %v3825_v59 }
0x1585   : > { %v3832_v39 = vsub.f32 %v3820_v62, %v3830_v38 }
0x1586   : > { %v3831_v54 = vsub.f32 %v3819_v37, %v3829_v6 }
0x1587   : > { %v3834_v9 = vmul.f32 %v3832_v39, %v3832_v39 }
0x1588   : > { %v3833_v46 = vmul.f32 %v3831_v54, %v3831_v54 }
0x1589   : > { %v3838_v11 = vsel %vm652_vm1, %v3834_v9, 0.0 }
0x158a   : > { %3839 = vadd.xlane.f32.xlu1 %v3838_v11  ;;  %v3835_v47 = vsel %vm652_vm1, %v3833_v46, 0.0 }
0x158b   : > { %3836 = vadd.xlane.f32.xlu0 %v3835_v47 }
0x1617   : > { %v3840_v40 = vpop.xlane.xlu1 %3839 }
0x1618   : > { %v3842_v3 = vmul.f32 0.03125, %v3840_v40  ;;  %v3837_v41 = vpop.xlane.xlu0 %3836 }
0x1619   : > { %v3841_v17 = vmul.f32 0.03125, %v3837_v41 }
0x161a   : > { %v3844_v42 = vadd.f32 1e-05, %v3842_v3 }
0x161b   : > { %v3843_v45 = vadd.f32 1e-05, %v3841_v17 }
0x161c   : > { %4856 = vrsqrt.f32 %v3844_v42 }
0x161d   : > { %4858 = vrsqrt.f32 %v3843_v45 }
0x1626   : > { %v4857_v48 = vpop.eup %4856 }
0x1627   : > { %v4859_v50 = vpop.eup %4858  ;;  %v3848_v51 = vmul.f32 %v4857_v48, %v3832_v39 }
0x1628   : > { %v3847_v52 = vmul.f32 %v4859_v50, %v3831_v54 }
0x1629   : > { %v3856_v21 = vmul.f32 %v4070_v49, %v3848_v51 }
0x162a   : > { %v3855_v31 = vmul.f32 %v4070_v49, %v3847_v52 }
0x162b   : > { %v3864_v53 = vadd.f32 %v4071_v22, %v3856_v21 }
0x162c   : > { %v3863_v32 = vadd.f32 %v4071_v22, %v3855_v31 }
0x162d   : > { %3866 = vst.msk [vmem:[%s541_s26 + $0x8] sm:$0xff] %vm652_vm1, %v3864_v53 }
0x162e   : > { %3865 = vst.msk [vmem:[%s541_s26] sm:$0xff] %vm652_vm1, %v3863_v32 }
0x162f   : > { %4873 = shalt.err (!%p4870_p3)
}
0x1630   : > { %s4874_s21 = scalar_lea.hbm %s5589_s2, 256  ;;  %s4878_s26 = scalar_lea.hbm %s5682_s20, 512 }
0x1631   : > { %p4875_p4 = scmp.ne.s32.totalorder %s5589_s2, %s4874_s21  ;;  %p4879_p9 = scmp.lt.u32.totalorder %s5589_s2, %s5682_s20 }
0x1632   : > { %p4880_p10 = scmp.lt.u32.totalorder %s4878_s26, %s4874_s21  ;;  %p4882_p12 = scmp.lt.u32.totalorder %s4874_s21, %s5589_s2 }
0x1633   : > { %p4876_p7 = pnand %p4875_p4, %p5060_p5 }
0x1634   : > { %p4881_p11 = por %p4880_p10, %p4879_p9 }
0x1635   : > { %p4877_p8 = pneg %p4876_p7 }
0x1636   : > { %p4883_p13 = por %p4882_p12, %p4881_p11 }
0x1638   : > { %p4884_p0 = pnand %p4883_p13, %p4877_p8 }
0x163a   : > { %4887 = shalt.err (!%p4884_p0)
}
0x163b   : > { %s4930_s24 = smov 128   ;;  %s4931_s22 = smov 8  }
0x163c   : > { %4634 = dma.vmem_to_hbm [thread:$0]  (%p5060_p5), %s5591_s0, 256, %s5589_s2, %s5595_s28, %s4930_s24, %s4930_s24, %s4931_s22  }
0x163d PF: > { %s5683_s17 = sld [smem:[#allocation7_spill]]  ;;  %s5684_s27 = sld [smem:[#allocation5_spill]] }
0x1643   : > { %p4640_p1 = scmp.ge.s32.totalorder %s5683_s17, 2  ;;  %s3896_s18 = sand.u32 1, %s5684_s27  }
0x1644   : > { %s3897_s21 = scalar_lea.sflag [#allocation3], %s3896_s18 }
0x1645   : > { %p4637_p2 = pnand %p4640_p1, %p5064_p6 }
0x1647   : > { %4905 = dma.done.wait (!%p4637_p2), %s3897_s21, 256  }
0x1648   : > { %4907 = vsyncadd (!%p4637_p2), %s3897_s21, 4294967040  ;;  %s5686_s27 = sld [smem:[#allocation8_spill]]  ;;  %s5687_s26 = sld [smem:[#allocation6_spill]] }
0x1649   : > { %s5688_s29 = sld [smem:[#allocation9_spill]]  ;;  %s5689_s24 = smov %s4914_s25 }
0x164e   : > { %p27_p3 = scmp.ge.s32.totalorder %s5686_s27, 4   ;;  %s5690_s25 = smov %s5687_s26 }
0x164f   : > { %s5691_s26 = smov %s5688_s29 }
0x1650   :  { %29 = sbr.rel (!%p27_p3) target bundleno = 8 (0x8), region = 134 }
0x1657   :  { %3902 = vsyncpa [#allocation3], 1 }
0x1658   :  { %3904 = vsyncpa [#allocation3 + $0x1], 1 }

</bundles_post_ra>
